<compile_context>
chip_gen: v6e
topology: v6e:2x2x1
jax: 0.10.0
libtpu: 0.0.40
codegen_flags: <defaults>
</compile_context>

<pallas_src>
import math

import jax
import jax.numpy as jnp
from jax.experimental import pallas as pl
from jax.experimental.pallas import tpu as pltpu

# ---- small, TPU-friendly synthetic shapes (module defaults 768/256/1 scaled down) ----
B, S, H = 2, 8, 32          # batch, seq, bert hidden ("input_size")
NH, DH = 2, 16              # heads, head dim
I = 64                      # FFN intermediate
HP = 16                     # predictor hidden ("hidden_size")
V = 50                      # synthetic vocab
LN_EPS = 1e-12

SLAB_W = 128                # lane width of the packed parameter slabs (lane-dense DMA tiles)
OUT_PAD = 128               # lane-dense output width

# weight-slab row offsets (all multiples of the bf16 sublane tile = 16)
R_WQKV = 0                  # (H, 3H) fused Q/K/V
R_WO = H                    # (H, H)
R_W1 = 2 * H                # (H, I)
R_W2 = 3 * H                # (I, H)
R_WP1 = 3 * H + I           # (H, HP)
W_ROWS = 4 * H + I          # 192 rows

# bias-slab rows (one vector per row, padded to SLAB_W lanes)
(BR_EG, BR_EB, BR_BQKV, BR_BO, BR_G1, BR_BE1, BR_BI1, BR_BI2,
 BR_G2, BR_BE2, BR_BP1, BR_WP2, BR_BP2) = range(13)
B_ROWS = 16

# merged embedding table rows: [word | token-type | position], each stored as a (1, H) row
TYPE_OFF = V
POS_OFF = V + 2
TAB_ROWS = V + 2 + S


def _ln(x, g, b):
    mu = jnp.mean(x, axis=-1, keepdims=True)
    var = jnp.mean((x - mu) ** 2, axis=-1, keepdims=True)
    return (x - mu) * jax.lax.rsqrt(var + LN_EPS) * g + b


def entailment_kernel(ids_ref, tt_ref, msk_ref, tab_ref, w_ref, b_ref, out_ref):
    # just-in-time parameter loads: Ref slices near their use, no full-slab materialization
    def weight(row, kdim, ndim):                     # (kdim, ndim) bf16
        return w_ref[row:row + kdim, 0:ndim]

    def bias(row, ndim):                             # (1, ndim) f32
        return b_ref[row:row + 1, 0:ndim]

    def mm(a, w):                                    # bf16 MXU matmul, f32 accumulation
        return jax.lax.dot_general(a.astype(jnp.bfloat16), w,
                                   (((1,), (0,)), ((), ())),
                                   preferred_element_type=jnp.float32)

    # ---- fused embedding gather: word + token-type rows per token (dynamic leading-dim reads) ----
    rows = []
    for b in range(B):
        for s in range(S):
            t = b * S + s
            rows.append(tab_ref[ids_ref[t]] + tab_ref[TYPE_OFF + tt_ref[t]])   # (1, H)
    x = jnp.concatenate(rows, axis=0).reshape(B, S, H)                         # (B, S, H)
    pos = jnp.concatenate([tab_ref[POS_OFF + s] for s in range(S)], axis=0)    # (S, H)
    x = x + pos[None, :, :]

    # ---- BERT embedding LayerNorm (all rows: needed for K/V) ----
    x = _ln(x, bias(BR_EG, H), bias(BR_EB, H))

    # ---- fused QKV for every token: one (B*S, H) @ (H, 3H) MXU matmul ----
    qkv = mm(x.reshape(B * S, H), weight(R_WQKV, H, 3 * H)) + bias(BR_BQKV, 3 * H)
    qkv = qkv.reshape(B, S, 3 * H)
    k = qkv[:, :, H:2 * H]                                                     # (B, S, H)
    v = qkv[:, :, 2 * H:3 * H]                                                 # (B, S, H)
    q_cls = qkv[:, 0, 0:H]                                                     # (B, H) CLS query
    cls_x = x[:, 0, :]                                                         # (B, H)

    # ---- additive attention mask built from SMEM scalars (no dedicated mask DMA) ----
    pos2d = (jax.lax.broadcasted_iota(jnp.int32, (B, S), 0) * S
             + jax.lax.broadcasted_iota(jnp.int32, (B, S), 1))
    neg = jnp.zeros((B, S), jnp.float32)
    for t in range(B * S):
        keep = msk_ref[t]                                                      # int32, 1 = attend
        neg = neg + jnp.where(pos2d == t,
                              (keep - 1).astype(jnp.float32) * 1e9, 0.0)

    # ---- CLS-row attention on the VPU/XLU (no tiny per-batch MXU pushes) ----
    scale = 1.0 / math.sqrt(DH)
    ctx_heads = []
    for h in range(NH):                               # static unrolled loop over heads
        lo = h * DH
        qh = q_cls[:, lo:lo + DH]                     # (B, DH)
        kh = k[:, :, lo:lo + DH]                      # (B, S, DH)
        vh = v[:, :, lo:lo + DH]                      # (B, S, DH)
        s_h = jnp.sum(qh[:, None, :] * kh, axis=-1) * scale + neg              # (B, S)
        s_h = s_h - jnp.max(s_h, axis=-1, keepdims=True)
        p = jnp.exp(s_h)
        p = p * pl.reciprocal(jnp.sum(p, axis=-1, keepdims=True), approx=True)
        ctx_heads.append(jnp.sum(p[:, :, None] * vh, axis=1))                  # (B, DH)
    ctx = jnp.concatenate(ctx_heads, axis=-1)                                  # (B, H)

    attn = mm(ctx, weight(R_WO, H, H)) + bias(BR_BO, H)                        # single Wo matmul
    x0 = _ln(cls_x + attn, bias(BR_G1, H), bias(BR_BE1, H))                    # (B, H)

    # ---- FFN (GELU) + residual LayerNorm -> last_hidden_state[:, 0, :] ----
    # TODO(synk): HF BERT uses exact erf GELU; tanh approximation kept (EUP tanh path).
    h1 = jax.nn.gelu(mm(x0, weight(R_W1, H, I)) + bias(BR_BI1, I), approximate=True)
    ffn = mm(h1, weight(R_W2, I, H)) + bias(BR_BI2, H)
    y0 = _ln(x0 + ffn, bias(BR_G2, H), bias(BR_BE2, H))                        # (B, H)

    # ---- predictor head: Linear -> ReLU -> Linear ----
    p1 = jnp.maximum(mm(y0, weight(R_WP1, H, HP)) + bias(BR_BP1, HP), 0.0)     # (B, HP)
    # final (HP -> 1) linear as wp2 @ p1^T so the B logits land lane-major: (1, B)
    logits = jax.lax.dot_general(bias(BR_WP2, HP), p1,
                                 (((1,), (1,)), ((), ())),
                                 preferred_element_type=jnp.float32) + bias(BR_BP2, 1)
    # lane-dense full-row store (pad to 128 lanes)
    out_ref[...] = jnp.concatenate(
        [logits, jnp.zeros((1, OUT_PAD - B), jnp.float32)], axis=1)


def make_params(key):
    keys = jax.random.split(key, 12)

    def xavier(k, shape):
        fan_in, fan_out = shape
        lim = math.sqrt(6.0 / (fan_in + fan_out))
        return jax.random.uniform(k, shape, jnp.float32, -lim, lim)

    def normal(k, shape, std=0.02):
        return std * jax.random.normal(k, shape, dtype=jnp.float32)

    p = {}
    # synthetic BERT embeddings + encoder layer
    p["word_emb"] = normal(keys[0], (V, H))
    p["type_emb"] = normal(keys[1], (2, H))
    p["pos_emb"] = normal(keys[2], (S, H))
    p["eg"], p["eb"] = jnp.ones((1, H)), jnp.zeros((1, H))
    p["wq"], p["bq"] = xavier(keys[3], (H, H)), jnp.zeros((1, H))
    p["wk"], p["bk"] = xavier(keys[4], (H, H)), jnp.zeros((1, H))
    p["wv"], p["bv"] = xavier(keys[5], (H, H)), jnp.zeros((1, H))
    p["wo"], p["bo"] = xavier(keys[6], (H, H)), jnp.zeros((1, H))
    p["g1"], p["be1"] = jnp.ones((1, H)), jnp.zeros((1, H))
    p["w1"], p["bi1"] = xavier(keys[7], (H, I)), jnp.zeros((1, I))
    p["w2"], p["bi2"] = xavier(keys[8], (I, H)), jnp.zeros((1, H))
    p["g2"], p["be2"] = jnp.ones((1, H)), jnp.zeros((1, H))
    # predictor: xavier_uniform weights, zero biases (matches the module's __init__)
    p["wp1"], p["bp1"] = xavier(keys[9], (H, HP)), jnp.zeros((1, HP))
    p["wp2"], p["bp2"] = xavier(keys[10], (HP, 1)), jnp.zeros((1, 1))
    return p


def pack_params(p):
    """Runs ONCE at init (hoisted out of the jitted forward): merges all embedding tables into
    one (TAB_ROWS, 1, H) VMEM table and packs the 19 small weight/bias tensors into one 128-lane
    bf16 weight slab and one 128-lane f32 bias slab (3 VMEM DMAs per call)."""
    def padw(w):
        return jnp.pad(w, ((0, 0), (0, SLAB_W - w.shape[1])))

    table = jnp.concatenate([p["word_emb"], p["type_emb"], p["pos_emb"]],
                            axis=0).reshape(TAB_ROWS, 1, H)                     # (60, 1, H) f32

    wqkv = jnp.concatenate([p["wq"], p["wk"], p["wv"]], axis=1)                 # (H, 3H)
    wslab = jnp.concatenate(
        [padw(wqkv), padw(p["wo"]), padw(p["w1"]), padw(p["w2"]),
         padw(p["wp1"])], axis=0).astype(jnp.bfloat16)                          # (W_ROWS, 128)

    bqkv = jnp.concatenate([p["bq"], p["bk"], p["bv"]], axis=1)                 # (1, 3H)
    brows = [p["eg"], p["eb"], bqkv, p["bo"], p["g1"], p["be1"],
             p["bi1"], p["bi2"], p["g2"], p["be2"], p["bp1"],
             p["wp2"].T,                                                        # (1, HP)
             p["bp2"]]                                                          # (1, 1)
    bslab = jnp.concatenate([padw(r) for r in brows], axis=0)
    bslab = jnp.pad(bslab, ((0, B_ROWS - bslab.shape[0]), (0, 0)))              # (16, 128) f32
    return table, wslab, bslab


@jax.jit
def entailment_forward(table, wslab, bslab, input_ids, attention_mask, token_type_ids):
    # flatten the int inputs to 1-D SMEM scalars (row-major reshape = free bitcast)
    ids = input_ids.reshape(-1).astype(jnp.int32)
    tts = token_type_ids.reshape(-1).astype(jnp.int32)
    msk = attention_mask.reshape(-1).astype(jnp.int32)

    # Single invocation, no grid: the whole (tiny) problem lives in VMEM/SMEM.
    out = pl.pallas_call(
        entailment_kernel,
        out_shape=jax.ShapeDtypeStruct((1, OUT_PAD), jnp.float32),
        in_specs=[
            pl.BlockSpec(memory_space=pltpu.MemorySpace.SMEM),   # input_ids
            pl.BlockSpec(memory_space=pltpu.MemorySpace.SMEM),   # token_type_ids
            pl.BlockSpec(memory_space=pltpu.MemorySpace.SMEM),   # attention_mask
            pl.BlockSpec(memory_space=pltpu.MemorySpace.VMEM),   # merged embedding table
            pl.BlockSpec(memory_space=pltpu.MemorySpace.VMEM),   # bf16 weight slab
            pl.BlockSpec(memory_space=pltpu.MemorySpace.VMEM),   # f32 bias slab
        ],
        out_specs=pl.BlockSpec(memory_space=pltpu.MemorySpace.VMEM),
    )(ids, tts, msk, table, wslab, bslab)

    return out[0, :B]                                # matches .squeeze() -> shape (B,)


if __name__ == "__main__":
    key = jax.random.PRNGKey(0)
    kp, kid = jax.random.split(key)
    params = make_params(kp)
    table, wslab, bslab = pack_params(params)        # packed once at init, reused every call

    input_ids = jax.random.randint(kid, (B, S), 0, V, dtype=jnp.int32)
    attention_mask = jnp.array([[1] * S, [1] * 6 + [0] * 2], dtype=jnp.int32)
    token_type_ids = jnp.concatenate(
        [jnp.zeros((B, S // 2), jnp.int32), jnp.ones((B, S // 2), jnp.int32)], axis=1)

    out = entailment_forward(table, wslab, bslab, input_ids, attention_mask, token_type_ids)
    jax.block_until_ready(out)
    assert out.shape == (B,)
    print("KERNEL_OK")
</pallas_src>

<mosaic_0001>
module attributes {stable_mosaic.version = 11 : i64} {
  func.func @entailment_kernel(%arg0: memref<16xi32, #tpu.memory_space<smem>>, %arg1: memref<16xi32, #tpu.memory_space<smem>>, %arg2: memref<16xi32, #tpu.memory_space<smem>>, %arg3: memref<60x1x32xf32, #tpu.memory_space<vmem>>, %arg4: memref<192x128xbf16, #tpu.memory_space<vmem>>, %arg5: memref<16x128xf32, #tpu.memory_space<vmem>>, %arg6: memref<1x128xf32, #tpu.memory_space<vmem>>) attributes {dimension_semantics = [], scalar_prefetch = 0 : i64, scratch_operands = 0 : i64, tpu.core_type = #tpu.core_type<tc>} {
    %c0 = arith.constant 0 : index
    %0 = memref.load %arg0[%c0] : memref<16xi32, #tpu.memory_space<smem>>
    %1 = arith.index_cast %0 : i32 to index
    %c0_0 = arith.constant 0 : index
    %c0_1 = arith.constant 0 : index
    %2 = vector.load %arg3[%1, %c0_0, %c0_1] : memref<60x1x32xf32, #tpu.memory_space<vmem>>, vector<1x1x32xf32>
    %3 = vector.shape_cast %2 : vector<1x1x32xf32> to vector<1x32xf32>
    %c0_2 = arith.constant 0 : index
    %4 = memref.load %arg1[%c0_2] : memref<16xi32, #tpu.memory_space<smem>>
    %c50_i32 = arith.constant 50 : i32
    %5 = arith.addi %c50_i32, %4 : i32
    %6 = arith.index_cast %5 : i32 to index
    %c0_3 = arith.constant 0 : index
    %c0_4 = arith.constant 0 : index
    %7 = vector.load %arg3[%6, %c0_3, %c0_4] : memref<60x1x32xf32, #tpu.memory_space<vmem>>, vector<1x1x32xf32>
    %8 = vector.shape_cast %7 : vector<1x1x32xf32> to vector<1x32xf32>
    %9 = arith.addf %3, %8 : vector<1x32xf32>
    %c1 = arith.constant 1 : index
    %10 = memref.load %arg0[%c1] : memref<16xi32, #tpu.memory_space<smem>>
    %11 = arith.index_cast %10 : i32 to index
    %c0_5 = arith.constant 0 : index
    %c0_6 = arith.constant 0 : index
    %12 = vector.load %arg3[%11, %c0_5, %c0_6] : memref<60x1x32xf32, #tpu.memory_space<vmem>>, vector<1x1x32xf32>
    %13 = vector.shape_cast %12 : vector<1x1x32xf32> to vector<1x32xf32>
    %c1_7 = arith.constant 1 : index
    %14 = memref.load %arg1[%c1_7] : memref<16xi32, #tpu.memory_space<smem>>
    %c50_i32_8 = arith.constant 50 : i32
    %15 = arith.addi %c50_i32_8, %14 : i32
    %16 = arith.index_cast %15 : i32 to index
    %c0_9 = arith.constant 0 : index
    %c0_10 = arith.constant 0 : index
    %17 = vector.load %arg3[%16, %c0_9, %c0_10] : memref<60x1x32xf32, #tpu.memory_space<vmem>>, vector<1x1x32xf32>
    %18 = vector.shape_cast %17 : vector<1x1x32xf32> to vector<1x32xf32>
    %19 = arith.addf %13, %18 : vector<1x32xf32>
    %c2 = arith.constant 2 : index
    %20 = memref.load %arg0[%c2] : memref<16xi32, #tpu.memory_space<smem>>
    %21 = arith.index_cast %20 : i32 to index
    %c0_11 = arith.constant 0 : index
    %c0_12 = arith.constant 0 : index
    %22 = vector.load %arg3[%21, %c0_11, %c0_12] : memref<60x1x32xf32, #tpu.memory_space<vmem>>, vector<1x1x32xf32>
    %23 = vector.shape_cast %22 : vector<1x1x32xf32> to vector<1x32xf32>
    %c2_13 = arith.constant 2 : index
    %24 = memref.load %arg1[%c2_13] : memref<16xi32, #tpu.memory_space<smem>>
    %c50_i32_14 = arith.constant 50 : i32
    %25 = arith.addi %c50_i32_14, %24 : i32
    %26 = arith.index_cast %25 : i32 to index
    %c0_15 = arith.constant 0 : index
    %c0_16 = arith.constant 0 : index
    %27 = vector.load %arg3[%26, %c0_15, %c0_16] : memref<60x1x32xf32, #tpu.memory_space<vmem>>, vector<1x1x32xf32>
    %28 = vector.shape_cast %27 : vector<1x1x32xf32> to vector<1x32xf32>
    %29 = arith.addf %23, %28 : vector<1x32xf32>
    %c3 = arith.constant 3 : index
    %30 = memref.load %arg0[%c3] : memref<16xi32, #tpu.memory_space<smem>>
    %31 = arith.index_cast %30 : i32 to index
    %c0_17 = arith.constant 0 : index
    %c0_18 = arith.constant 0 : index
    %32 = vector.load %arg3[%31, %c0_17, %c0_18] : memref<60x1x32xf32, #tpu.memory_space<vmem>>, vector<1x1x32xf32>
    %33 = vector.shape_cast %32 : vector<1x1x32xf32> to vector<1x32xf32>
    %c3_19 = arith.constant 3 : index
    %34 = memref.load %arg1[%c3_19] : memref<16xi32, #tpu.memory_space<smem>>
    %c50_i32_20 = arith.constant 50 : i32
    %35 = arith.addi %c50_i32_20, %34 : i32
    %36 = arith.index_cast %35 : i32 to index
    %c0_21 = arith.constant 0 : index
    %c0_22 = arith.constant 0 : index
    %37 = vector.load %arg3[%36, %c0_21, %c0_22] : memref<60x1x32xf32, #tpu.memory_space<vmem>>, vector<1x1x32xf32>
    %38 = vector.shape_cast %37 : vector<1x1x32xf32> to vector<1x32xf32>
    %39 = arith.addf %33, %38 : vector<1x32xf32>
    %c4 = arith.constant 4 : index
    %40 = memref.load %arg0[%c4] : memref<16xi32, #tpu.memory_space<smem>>
    %41 = arith.index_cast %40 : i32 to index
    %c0_23 = arith.constant 0 : index
    %c0_24 = arith.constant 0 : index
    %42 = vector.load %arg3[%41, %c0_23, %c0_24] : memref<60x1x32xf32, #tpu.memory_space<vmem>>, vector<1x1x32xf32>
    %43 = vector.shape_cast %42 : vector<1x1x32xf32> to vector<1x32xf32>
    %c4_25 = arith.constant 4 : index
    %44 = memref.load %arg1[%c4_25] : memref<16xi32, #tpu.memory_space<smem>>
    %c50_i32_26 = arith.constant 50 : i32
    %45 = arith.addi %c50_i32_26, %44 : i32
    %46 = arith.index_cast %45 : i32 to index
    %c0_27 = arith.constant 0 : index
    %c0_28 = arith.constant 0 : index
    %47 = vector.load %arg3[%46, %c0_27, %c0_28] : memref<60x1x32xf32, #tpu.memory_space<vmem>>, vector<1x1x32xf32>
    %48 = vector.shape_cast %47 : vector<1x1x32xf32> to vector<1x32xf32>
    %49 = arith.addf %43, %48 : vector<1x32xf32>
    %c5 = arith.constant 5 : index
    %50 = memref.load %arg0[%c5] : memref<16xi32, #tpu.memory_space<smem>>
    %51 = arith.index_cast %50 : i32 to index
    %c0_29 = arith.constant 0 : index
    %c0_30 = arith.constant 0 : index
    %52 = vector.load %arg3[%51, %c0_29, %c0_30] : memref<60x1x32xf32, #tpu.memory_space<vmem>>, vector<1x1x32xf32>
    %53 = vector.shape_cast %52 : vector<1x1x32xf32> to vector<1x32xf32>
    %c5_31 = arith.constant 5 : index
    %54 = memref.load %arg1[%c5_31] : memref<16xi32, #tpu.memory_space<smem>>
    %c50_i32_32 = arith.constant 50 : i32
    %55 = arith.addi %c50_i32_32, %54 : i32
    %56 = arith.index_cast %55 : i32 to index
    %c0_33 = arith.constant 0 : index
    %c0_34 = arith.constant 0 : index
    %57 = vector.load %arg3[%56, %c0_33, %c0_34] : memref<60x1x32xf32, #tpu.memory_space<vmem>>, vector<1x1x32xf32>
    %58 = vector.shape_cast %57 : vector<1x1x32xf32> to vector<1x32xf32>
    %59 = arith.addf %53, %58 : vector<1x32xf32>
    %c6 = arith.constant 6 : index
    %60 = memref.load %arg0[%c6] : memref<16xi32, #tpu.memory_space<smem>>
    %61 = arith.index_cast %60 : i32 to index
    %c0_35 = arith.constant 0 : index
    %c0_36 = arith.constant 0 : index
    %62 = vector.load %arg3[%61, %c0_35, %c0_36] : memref<60x1x32xf32, #tpu.memory_space<vmem>>, vector<1x1x32xf32>
    %63 = vector.shape_cast %62 : vector<1x1x32xf32> to vector<1x32xf32>
    %c6_37 = arith.constant 6 : index
    %64 = memref.load %arg1[%c6_37] : memref<16xi32, #tpu.memory_space<smem>>
    %c50_i32_38 = arith.constant 50 : i32
    %65 = arith.addi %c50_i32_38, %64 : i32
    %66 = arith.index_cast %65 : i32 to index
    %c0_39 = arith.constant 0 : index
    %c0_40 = arith.constant 0 : index
    %67 = vector.load %arg3[%66, %c0_39, %c0_40] : memref<60x1x32xf32, #tpu.memory_space<vmem>>, vector<1x1x32xf32>
    %68 = vector.shape_cast %67 : vector<1x1x32xf32> to vector<1x32xf32>
    %69 = arith.addf %63, %68 : vector<1x32xf32>
    %c7 = arith.constant 7 : index
    %70 = memref.load %arg0[%c7] : memref<16xi32, #tpu.memory_space<smem>>
    %71 = arith.index_cast %70 : i32 to index
    %c0_41 = arith.constant 0 : index
    %c0_42 = arith.constant 0 : index
    %72 = vector.load %arg3[%71, %c0_41, %c0_42] : memref<60x1x32xf32, #tpu.memory_space<vmem>>, vector<1x1x32xf32>
    %73 = vector.shape_cast %72 : vector<1x1x32xf32> to vector<1x32xf32>
    %c7_43 = arith.constant 7 : index
    %74 = memref.load %arg1[%c7_43] : memref<16xi32, #tpu.memory_space<smem>>
    %c50_i32_44 = arith.constant 50 : i32
    %75 = arith.addi %c50_i32_44, %74 : i32
    %76 = arith.index_cast %75 : i32 to index
    %c0_45 = arith.constant 0 : index
    %c0_46 = arith.constant 0 : index
    %77 = vector.load %arg3[%76, %c0_45, %c0_46] : memref<60x1x32xf32, #tpu.memory_space<vmem>>, vector<1x1x32xf32>
    %78 = vector.shape_cast %77 : vector<1x1x32xf32> to vector<1x32xf32>
    %79 = arith.addf %73, %78 : vector<1x32xf32>
    %c8 = arith.constant 8 : index
    %80 = memref.load %arg0[%c8] : memref<16xi32, #tpu.memory_space<smem>>
    %81 = arith.index_cast %80 : i32 to index
    %c0_47 = arith.constant 0 : index
    %c0_48 = arith.constant 0 : index
    %82 = vector.load %arg3[%81, %c0_47, %c0_48] : memref<60x1x32xf32, #tpu.memory_space<vmem>>, vector<1x1x32xf32>
    %83 = vector.shape_cast %82 : vector<1x1x32xf32> to vector<1x32xf32>
    %c8_49 = arith.constant 8 : index
    %84 = memref.load %arg1[%c8_49] : memref<16xi32, #tpu.memory_space<smem>>
    %c50_i32_50 = arith.constant 50 : i32
    %85 = arith.addi %c50_i32_50, %84 : i32
    %86 = arith.index_cast %85 : i32 to index
    %c0_51 = arith.constant 0 : index
    %c0_52 = arith.constant 0 : index
    %87 = vector.load %arg3[%86, %c0_51, %c0_52] : memref<60x1x32xf32, #tpu.memory_space<vmem>>, vector<1x1x32xf32>
    %88 = vector.shape_cast %87 : vector<1x1x32xf32> to vector<1x32xf32>
    %89 = arith.addf %83, %88 : vector<1x32xf32>
    %c9 = arith.constant 9 : index
    %90 = memref.load %arg0[%c9] : memref<16xi32, #tpu.memory_space<smem>>
    %91 = arith.index_cast %90 : i32 to index
    %c0_53 = arith.constant 0 : index
    %c0_54 = arith.constant 0 : index
    %92 = vector.load %arg3[%91, %c0_53, %c0_54] : memref<60x1x32xf32, #tpu.memory_space<vmem>>, vector<1x1x32xf32>
    %93 = vector.shape_cast %92 : vector<1x1x32xf32> to vector<1x32xf32>
    %c9_55 = arith.constant 9 : index
    %94 = memref.load %arg1[%c9_55] : memref<16xi32, #tpu.memory_space<smem>>
    %c50_i32_56 = arith.constant 50 : i32
    %95 = arith.addi %c50_i32_56, %94 : i32
    %96 = arith.index_cast %95 : i32 to index
    %c0_57 = arith.constant 0 : index
    %c0_58 = arith.constant 0 : index
    %97 = vector.load %arg3[%96, %c0_57, %c0_58] : memref<60x1x32xf32, #tpu.memory_space<vmem>>, vector<1x1x32xf32>
    %98 = vector.shape_cast %97 : vector<1x1x32xf32> to vector<1x32xf32>
    %99 = arith.addf %93, %98 : vector<1x32xf32>
    %c10 = arith.constant 10 : index
    %100 = memref.load %arg0[%c10] : memref<16xi32, #tpu.memory_space<smem>>
    %101 = arith.index_cast %100 : i32 to index
    %c0_59 = arith.constant 0 : index
    %c0_60 = arith.constant 0 : index
    %102 = vector.load %arg3[%101, %c0_59, %c0_60] : memref<60x1x32xf32, #tpu.memory_space<vmem>>, vector<1x1x32xf32>
    %103 = vector.shape_cast %102 : vector<1x1x32xf32> to vector<1x32xf32>
    %c10_61 = arith.constant 10 : index
    %104 = memref.load %arg1[%c10_61] : memref<16xi32, #tpu.memory_space<smem>>
    %c50_i32_62 = arith.constant 50 : i32
    %105 = arith.addi %c50_i32_62, %104 : i32
    %106 = arith.index_cast %105 : i32 to index
    %c0_63 = arith.constant 0 : index
    %c0_64 = arith.constant 0 : index
    %107 = vector.load %arg3[%106, %c0_63, %c0_64] : memref<60x1x32xf32, #tpu.memory_space<vmem>>, vector<1x1x32xf32>
    %108 = vector.shape_cast %107 : vector<1x1x32xf32> to vector<1x32xf32>
    %109 = arith.addf %103, %108 : vector<1x32xf32>
    %c11 = arith.constant 11 : index
    %110 = memref.load %arg0[%c11] : memref<16xi32, #tpu.memory_space<smem>>
    %111 = arith.index_cast %110 : i32 to index
    %c0_65 = arith.constant 0 : index
    %c0_66 = arith.constant 0 : index
    %112 = vector.load %arg3[%111, %c0_65, %c0_66] : memref<60x1x32xf32, #tpu.memory_space<vmem>>, vector<1x1x32xf32>
    %113 = vector.shape_cast %112 : vector<1x1x32xf32> to vector<1x32xf32>
    %c11_67 = arith.constant 11 : index
    %114 = memref.load %arg1[%c11_67] : memref<16xi32, #tpu.memory_space<smem>>
    %c50_i32_68 = arith.constant 50 : i32
    %115 = arith.addi %c50_i32_68, %114 : i32
    %116 = arith.index_cast %115 : i32 to index
    %c0_69 = arith.constant 0 : index
    %c0_70 = arith.constant 0 : index
    %117 = vector.load %arg3[%116, %c0_69, %c0_70] : memref<60x1x32xf32, #tpu.memory_space<vmem>>, vector<1x1x32xf32>
    %118 = vector.shape_cast %117 : vector<1x1x32xf32> to vector<1x32xf32>
    %119 = arith.addf %113, %118 : vector<1x32xf32>
    %c12 = arith.constant 12 : index
    %120 = memref.load %arg0[%c12] : memref<16xi32, #tpu.memory_space<smem>>
    %121 = arith.index_cast %120 : i32 to index
    %c0_71 = arith.constant 0 : index
    %c0_72 = arith.constant 0 : index
    %122 = vector.load %arg3[%121, %c0_71, %c0_72] : memref<60x1x32xf32, #tpu.memory_space<vmem>>, vector<1x1x32xf32>
    %123 = vector.shape_cast %122 : vector<1x1x32xf32> to vector<1x32xf32>
    %c12_73 = arith.constant 12 : index
    %124 = memref.load %arg1[%c12_73] : memref<16xi32, #tpu.memory_space<smem>>
    %c50_i32_74 = arith.constant 50 : i32
    %125 = arith.addi %c50_i32_74, %124 : i32
    %126 = arith.index_cast %125 : i32 to index
    %c0_75 = arith.constant 0 : index
    %c0_76 = arith.constant 0 : index
    %127 = vector.load %arg3[%126, %c0_75, %c0_76] : memref<60x1x32xf32, #tpu.memory_space<vmem>>, vector<1x1x32xf32>
    %128 = vector.shape_cast %127 : vector<1x1x32xf32> to vector<1x32xf32>
    %129 = arith.addf %123, %128 : vector<1x32xf32>
    %c13 = arith.constant 13 : index
    %130 = memref.load %arg0[%c13] : memref<16xi32, #tpu.memory_space<smem>>
    %131 = arith.index_cast %130 : i32 to index
    %c0_77 = arith.constant 0 : index
    %c0_78 = arith.constant 0 : index
    %132 = vector.load %arg3[%131, %c0_77, %c0_78] : memref<60x1x32xf32, #tpu.memory_space<vmem>>, vector<1x1x32xf32>
    %133 = vector.shape_cast %132 : vector<1x1x32xf32> to vector<1x32xf32>
    %c13_79 = arith.constant 13 : index
    %134 = memref.load %arg1[%c13_79] : memref<16xi32, #tpu.memory_space<smem>>
    %c50_i32_80 = arith.constant 50 : i32
    %135 = arith.addi %c50_i32_80, %134 : i32
    %136 = arith.index_cast %135 : i32 to index
    %c0_81 = arith.constant 0 : index
    %c0_82 = arith.constant 0 : index
    %137 = vector.load %arg3[%136, %c0_81, %c0_82] : memref<60x1x32xf32, #tpu.memory_space<vmem>>, vector<1x1x32xf32>
    %138 = vector.shape_cast %137 : vector<1x1x32xf32> to vector<1x32xf32>
    %139 = arith.addf %133, %138 : vector<1x32xf32>
    %c14 = arith.constant 14 : index
    %140 = memref.load %arg0[%c14] : memref<16xi32, #tpu.memory_space<smem>>
    %141 = arith.index_cast %140 : i32 to index
    %c0_83 = arith.constant 0 : index
    %c0_84 = arith.constant 0 : index
    %142 = vector.load %arg3[%141, %c0_83, %c0_84] : memref<60x1x32xf32, #tpu.memory_space<vmem>>, vector<1x1x32xf32>
    %143 = vector.shape_cast %142 : vector<1x1x32xf32> to vector<1x32xf32>
    %c14_85 = arith.constant 14 : index
    %144 = memref.load %arg1[%c14_85] : memref<16xi32, #tpu.memory_space<smem>>
    %c50_i32_86 = arith.constant 50 : i32
    %145 = arith.addi %c50_i32_86, %144 : i32
    %146 = arith.index_cast %145 : i32 to index
    %c0_87 = arith.constant 0 : index
    %c0_88 = arith.constant 0 : index
    %147 = vector.load %arg3[%146, %c0_87, %c0_88] : memref<60x1x32xf32, #tpu.memory_space<vmem>>, vector<1x1x32xf32>
    %148 = vector.shape_cast %147 : vector<1x1x32xf32> to vector<1x32xf32>
    %149 = arith.addf %143, %148 : vector<1x32xf32>
    %c15 = arith.constant 15 : index
    %150 = memref.load %arg0[%c15] : memref<16xi32, #tpu.memory_space<smem>>
    %151 = arith.index_cast %150 : i32 to index
    %c0_89 = arith.constant 0 : index
    %c0_90 = arith.constant 0 : index
    %152 = vector.load %arg3[%151, %c0_89, %c0_90] : memref<60x1x32xf32, #tpu.memory_space<vmem>>, vector<1x1x32xf32>
    %153 = vector.shape_cast %152 : vector<1x1x32xf32> to vector<1x32xf32>
    %c15_91 = arith.constant 15 : index
    %154 = memref.load %arg1[%c15_91] : memref<16xi32, #tpu.memory_space<smem>>
    %c50_i32_92 = arith.constant 50 : i32
    %155 = arith.addi %c50_i32_92, %154 : i32
    %156 = arith.index_cast %155 : i32 to index
    %c0_93 = arith.constant 0 : index
    %c0_94 = arith.constant 0 : index
    %157 = vector.load %arg3[%156, %c0_93, %c0_94] : memref<60x1x32xf32, #tpu.memory_space<vmem>>, vector<1x1x32xf32>
    %158 = vector.shape_cast %157 : vector<1x1x32xf32> to vector<1x32xf32>
    %159 = arith.addf %153, %158 : vector<1x32xf32>
    %160 = tpu.concatenate %9, %19, %29, %39, %49, %59, %69, %79, %89, %99, %109, %119, %129, %139, %149, %159 in 0 : vector<1x32xf32>, vector<1x32xf32>, vector<1x32xf32>, vector<1x32xf32>, vector<1x32xf32>, vector<1x32xf32>, vector<1x32xf32>, vector<1x32xf32>, vector<1x32xf32>, vector<1x32xf32>, vector<1x32xf32>, vector<1x32xf32>, vector<1x32xf32>, vector<1x32xf32>, vector<1x32xf32>, vector<1x32xf32> -> vector<16x32xf32>
    %161 = vector.shape_cast %160 : vector<16x32xf32> to vector<2x8x32xf32>
    %c52 = arith.constant 52 : index
    %c0_95 = arith.constant 0 : index
    %c0_96 = arith.constant 0 : index
    %162 = vector.load %arg3[%c52, %c0_95, %c0_96] : memref<60x1x32xf32, #tpu.memory_space<vmem>>, vector<1x1x32xf32>
    %163 = vector.shape_cast %162 : vector<1x1x32xf32> to vector<1x32xf32>
    %c53 = arith.constant 53 : index
    %c0_97 = arith.constant 0 : index
    %c0_98 = arith.constant 0 : index
    %164 = vector.load %arg3[%c53, %c0_97, %c0_98] : memref<60x1x32xf32, #tpu.memory_space<vmem>>, vector<1x1x32xf32>
    %165 = vector.shape_cast %164 : vector<1x1x32xf32> to vector<1x32xf32>
    %c54 = arith.constant 54 : index
    %c0_99 = arith.constant 0 : index
    %c0_100 = arith.constant 0 : index
    %166 = vector.load %arg3[%c54, %c0_99, %c0_100] : memref<60x1x32xf32, #tpu.memory_space<vmem>>, vector<1x1x32xf32>
    %167 = vector.shape_cast %166 : vector<1x1x32xf32> to vector<1x32xf32>
    %c55 = arith.constant 55 : index
    %c0_101 = arith.constant 0 : index
    %c0_102 = arith.constant 0 : index
    %168 = vector.load %arg3[%c55, %c0_101, %c0_102] : memref<60x1x32xf32, #tpu.memory_space<vmem>>, vector<1x1x32xf32>
    %169 = vector.shape_cast %168 : vector<1x1x32xf32> to vector<1x32xf32>
    %c56 = arith.constant 56 : index
    %c0_103 = arith.constant 0 : index
    %c0_104 = arith.constant 0 : index
    %170 = vector.load %arg3[%c56, %c0_103, %c0_104] : memref<60x1x32xf32, #tpu.memory_space<vmem>>, vector<1x1x32xf32>
    %171 = vector.shape_cast %170 : vector<1x1x32xf32> to vector<1x32xf32>
    %c57 = arith.constant 57 : index
    %c0_105 = arith.constant 0 : index
    %c0_106 = arith.constant 0 : index
    %172 = vector.load %arg3[%c57, %c0_105, %c0_106] : memref<60x1x32xf32, #tpu.memory_space<vmem>>, vector<1x1x32xf32>
    %173 = vector.shape_cast %172 : vector<1x1x32xf32> to vector<1x32xf32>
    %c58 = arith.constant 58 : index
    %c0_107 = arith.constant 0 : index
    %c0_108 = arith.constant 0 : index
    %174 = vector.load %arg3[%c58, %c0_107, %c0_108] : memref<60x1x32xf32, #tpu.memory_space<vmem>>, vector<1x1x32xf32>
    %175 = vector.shape_cast %174 : vector<1x1x32xf32> to vector<1x32xf32>
    %c59 = arith.constant 59 : index
    %c0_109 = arith.constant 0 : index
    %c0_110 = arith.constant 0 : index
    %176 = vector.load %arg3[%c59, %c0_109, %c0_110] : memref<60x1x32xf32, #tpu.memory_space<vmem>>, vector<1x1x32xf32>
    %177 = vector.shape_cast %176 : vector<1x1x32xf32> to vector<1x32xf32>
    %178 = tpu.concatenate %163, %165, %167, %169, %171, %173, %175, %177 in 0 : vector<1x32xf32>, vector<1x32xf32>, vector<1x32xf32>, vector<1x32xf32>, vector<1x32xf32>, vector<1x32xf32>, vector<1x32xf32>, vector<1x32xf32> -> vector<8x32xf32>
    %179 = vector.shape_cast %178 : vector<8x32xf32> to vector<1x8x32xf32>
    %180 = vector.broadcast %179 : vector<1x8x32xf32> to vector<2x8x32xf32>
    %181 = arith.addf %161, %180 : vector<2x8x32xf32>
    %c0_111 = arith.constant 0 : index
    %c0_112 = arith.constant 0 : index
    %182 = vector.load %arg5[%c0_111, %c0_112] : memref<16x128xf32, #tpu.memory_space<vmem>>, vector<1x32xf32>
    %c1_113 = arith.constant 1 : index
    %c0_114 = arith.constant 0 : index
    %183 = vector.load %arg5[%c1_113, %c0_114] : memref<16x128xf32, #tpu.memory_space<vmem>>, vector<1x32xf32>
    %cst = arith.constant dense<0.000000e+00> : vector<2x8xf32>
    %184 = vector.multi_reduction <add>, %181, %cst [2] : vector<2x8x32xf32> to vector<2x8xf32>
    %185 = vector.shape_cast %184 : vector<2x8xf32> to vector<2x8x1xf32>
    %cst_115 = arith.constant 3.200000e+01 : f32
    %186 = vector.broadcast %cst_115 : f32 to vector<2x8x1xf32>
    %187 = arith.divf %185, %186 : vector<2x8x1xf32>
    %188 = vector.broadcast %187 : vector<2x8x1xf32> to vector<2x8x32xf32>
    %189 = arith.subf %181, %188 : vector<2x8x32xf32>
    %190 = arith.mulf %189, %189 : vector<2x8x32xf32>
    %cst_116 = arith.constant dense<0.000000e+00> : vector<2x8xf32>
    %191 = vector.multi_reduction <add>, %190, %cst_116 [2] : vector<2x8x32xf32> to vector<2x8xf32>
    %192 = vector.shape_cast %191 : vector<2x8xf32> to vector<2x8x1xf32>
    %cst_117 = arith.constant 3.200000e+01 : f32
    %193 = vector.broadcast %cst_117 : f32 to vector<2x8x1xf32>
    %194 = arith.divf %192, %193 : vector<2x8x1xf32>
    %195 = vector.broadcast %187 : vector<2x8x1xf32> to vector<2x8x32xf32>
    %196 = arith.subf %181, %195 : vector<2x8x32xf32>
    %cst_118 = arith.constant 9.99999996E-13 : f32
    %197 = vector.broadcast %cst_118 : f32 to vector<2x8x1xf32>
    %198 = arith.addf %194, %197 : vector<2x8x1xf32>
    %199 = math.rsqrt %198 : vector<2x8x1xf32>
    %200 = vector.broadcast %199 : vector<2x8x1xf32> to vector<2x8x32xf32>
    %201 = arith.mulf %196, %200 : vector<2x8x32xf32>
    %202 = vector.shape_cast %182 : vector<1x32xf32> to vector<1x1x32xf32>
    %203 = vector.broadcast %202 : vector<1x1x32xf32> to vector<2x8x32xf32>
    %204 = arith.mulf %201, %203 : vector<2x8x32xf32>
    %205 = vector.shape_cast %183 : vector<1x32xf32> to vector<1x1x32xf32>
    %206 = vector.broadcast %205 : vector<1x1x32xf32> to vector<2x8x32xf32>
    %207 = arith.addf %204, %206 : vector<2x8x32xf32>
    %208 = vector.shape_cast %207 : vector<2x8x32xf32> to vector<16x32xf32>
    %c0_119 = arith.constant 0 : index
    %c0_120 = arith.constant 0 : index
    %209 = vector.load %arg4[%c0_119, %c0_120] : memref<192x128xbf16, #tpu.memory_space<vmem>>, vector<32x96xbf16>
    %210 = arith.truncf %208 : vector<16x32xf32> to vector<16x32xbf16>
    %cst_121 = arith.constant dense<0.000000e+00> : vector<16x96xf32>
    %211 = tpu.matmul %210, %209, %cst_121 {dimension_numbers = #tpu.dot_dimension_numbers<[1], [0], [0], [1], [0, 0, 1, 1], [], []>} : vector<16x32xbf16>, vector<32x96xbf16>, vector<16x96xf32> -> vector<16x96xf32>
    %c2_122 = arith.constant 2 : index
    %c0_123 = arith.constant 0 : index
    %212 = vector.load %arg5[%c2_122, %c0_123] : memref<16x128xf32, #tpu.memory_space<vmem>>, vector<1x96xf32>
    %213 = vector.broadcast %212 : vector<1x96xf32> to vector<16x96xf32>
    %214 = arith.addf %211, %213 : vector<16x96xf32>
    %215 = vector.shape_cast %214 : vector<16x96xf32> to vector<2x8x96xf32>
    %216 = vector.extract_strided_slice %215 {offsets = [0, 0, 32], sizes = [2, 8, 32], strides = [1, 1, 1]} : vector<2x8x96xf32> to vector<2x8x32xf32>
    %217 = vector.extract_strided_slice %215 {offsets = [0, 0, 64], sizes = [2, 8, 32], strides = [1, 1, 1]} : vector<2x8x96xf32> to vector<2x8x32xf32>
    %218 = vector.extract_strided_slice %215 {offsets = [0, 0, 0], sizes = [2, 1, 32], strides = [1, 1, 1]} : vector<2x8x96xf32> to vector<2x1x32xf32>
    %219 = vector.shape_cast %218 : vector<2x1x32xf32> to vector<2x32xf32>
    %220 = vector.extract_strided_slice %207 {offsets = [0, 0, 0], sizes = [2, 1, 32], strides = [1, 1, 1]} : vector<2x8x32xf32> to vector<2x1x32xf32>
    %221 = vector.shape_cast %220 : vector<2x1x32xf32> to vector<2x32xf32>
    %222 = tpu.iota {dimensions = array<i32: 0>} : vector<2x8xi32>
    %c8_i32 = arith.constant 8 : i32
    %223 = vector.broadcast %c8_i32 : i32 to vector<2x8xi32>
    %224 = arith.muli %222, %223 : vector<2x8xi32>
    %225 = tpu.iota {dimensions = array<i32: 1>} : vector<2x8xi32>
    %226 = arith.addi %224, %225 : vector<2x8xi32>
    %cst_124 = arith.constant 0.000000e+00 : f32
    %227 = vector.broadcast %cst_124 : f32 to vector<2x8xf32>
    %c0_125 = arith.constant 0 : index
    %228 = memref.load %arg2[%c0_125] : memref<16xi32, #tpu.memory_space<smem>>
    %c0_i32 = arith.constant 0 : i32
    %229 = vector.broadcast %c0_i32 : i32 to vector<2x8xi32>
    %230 = arith.cmpi eq, %226, %229 : vector<2x8xi32>
    %c1_i32 = arith.constant 1 : i32
    %231 = arith.subi %228, %c1_i32 : i32
    %232 = arith.sitofp %231 : i32 to f32
    %cst_126 = arith.constant 1.000000e+09 : f32
    %233 = arith.mulf %232, %cst_126 : f32
    %cst_127 = arith.constant 0.000000e+00 : f32
    %234 = vector.broadcast %233 : f32 to vector<2x8xf32>
    %235 = vector.broadcast %cst_127 : f32 to vector<2x8xf32>
    %236 = arith.select %230, %234, %235 : vector<2x8xi1>, vector<2x8xf32>
    %237 = arith.addf %227, %236 : vector<2x8xf32>
    %c1_128 = arith.constant 1 : index
    %238 = memref.load %arg2[%c1_128] : memref<16xi32, #tpu.memory_space<smem>>
    %c1_i32_129 = arith.constant 1 : i32
    %239 = vector.broadcast %c1_i32_129 : i32 to vector<2x8xi32>
    %240 = arith.cmpi eq, %226, %239 : vector<2x8xi32>
    %c1_i32_130 = arith.constant 1 : i32
    %241 = arith.subi %238, %c1_i32_130 : i32
    %242 = arith.sitofp %241 : i32 to f32
    %cst_131 = arith.constant 1.000000e+09 : f32
    %243 = arith.mulf %242, %cst_131 : f32
    %cst_132 = arith.constant 0.000000e+00 : f32
    %244 = vector.broadcast %243 : f32 to vector<2x8xf32>
    %245 = vector.broadcast %cst_132 : f32 to vector<2x8xf32>
    %246 = arith.select %240, %244, %245 : vector<2x8xi1>, vector<2x8xf32>
    %247 = arith.addf %237, %246 : vector<2x8xf32>
    %c2_133 = arith.constant 2 : index
    %248 = memref.load %arg2[%c2_133] : memref<16xi32, #tpu.memory_space<smem>>
    %c2_i32 = arith.constant 2 : i32
    %249 = vector.broadcast %c2_i32 : i32 to vector<2x8xi32>
    %250 = arith.cmpi eq, %226, %249 : vector<2x8xi32>
    %c1_i32_134 = arith.constant 1 : i32
    %251 = arith.subi %248, %c1_i32_134 : i32
    %252 = arith.sitofp %251 : i32 to f32
    %cst_135 = arith.constant 1.000000e+09 : f32
    %253 = arith.mulf %252, %cst_135 : f32
    %cst_136 = arith.constant 0.000000e+00 : f32
    %254 = vector.broadcast %253 : f32 to vector<2x8xf32>
    %255 = vector.broadcast %cst_136 : f32 to vector<2x8xf32>
    %256 = arith.select %250, %254, %255 : vector<2x8xi1>, vector<2x8xf32>
    %257 = arith.addf %247, %256 : vector<2x8xf32>
    %c3_137 = arith.constant 3 : index
    %258 = memref.load %arg2[%c3_137] : memref<16xi32, #tpu.memory_space<smem>>
    %c3_i32 = arith.constant 3 : i32
    %259 = vector.broadcast %c3_i32 : i32 to vector<2x8xi32>
    %260 = arith.cmpi eq, %226, %259 : vector<2x8xi32>
    %c1_i32_138 = arith.constant 1 : i32
    %261 = arith.subi %258, %c1_i32_138 : i32
    %262 = arith.sitofp %261 : i32 to f32
    %cst_139 = arith.constant 1.000000e+09 : f32
    %263 = arith.mulf %262, %cst_139 : f32
    %cst_140 = arith.constant 0.000000e+00 : f32
    %264 = vector.broadcast %263 : f32 to vector<2x8xf32>
    %265 = vector.broadcast %cst_140 : f32 to vector<2x8xf32>
    %266 = arith.select %260, %264, %265 : vector<2x8xi1>, vector<2x8xf32>
    %267 = arith.addf %257, %266 : vector<2x8xf32>
    %c4_141 = arith.constant 4 : index
    %268 = memref.load %arg2[%c4_141] : memref<16xi32, #tpu.memory_space<smem>>
    %c4_i32 = arith.constant 4 : i32
    %269 = vector.broadcast %c4_i32 : i32 to vector<2x8xi32>
    %270 = arith.cmpi eq, %226, %269 : vector<2x8xi32>
    %c1_i32_142 = arith.constant 1 : i32
    %271 = arith.subi %268, %c1_i32_142 : i32
    %272 = arith.sitofp %271 : i32 to f32
    %cst_143 = arith.constant 1.000000e+09 : f32
    %273 = arith.mulf %272, %cst_143 : f32
    %cst_144 = arith.constant 0.000000e+00 : f32
    %274 = vector.broadcast %273 : f32 to vector<2x8xf32>
    %275 = vector.broadcast %cst_144 : f32 to vector<2x8xf32>
    %276 = arith.select %270, %274, %275 : vector<2x8xi1>, vector<2x8xf32>
    %277 = arith.addf %267, %276 : vector<2x8xf32>
    %c5_145 = arith.constant 5 : index
    %278 = memref.load %arg2[%c5_145] : memref<16xi32, #tpu.memory_space<smem>>
    %c5_i32 = arith.constant 5 : i32
    %279 = vector.broadcast %c5_i32 : i32 to vector<2x8xi32>
    %280 = arith.cmpi eq, %226, %279 : vector<2x8xi32>
    %c1_i32_146 = arith.constant 1 : i32
    %281 = arith.subi %278, %c1_i32_146 : i32
    %282 = arith.sitofp %281 : i32 to f32
    %cst_147 = arith.constant 1.000000e+09 : f32
    %283 = arith.mulf %282, %cst_147 : f32
    %cst_148 = arith.constant 0.000000e+00 : f32
    %284 = vector.broadcast %283 : f32 to vector<2x8xf32>
    %285 = vector.broadcast %cst_148 : f32 to vector<2x8xf32>
    %286 = arith.select %280, %284, %285 : vector<2x8xi1>, vector<2x8xf32>
    %287 = arith.addf %277, %286 : vector<2x8xf32>
    %c6_149 = arith.constant 6 : index
    %288 = memref.load %arg2[%c6_149] : memref<16xi32, #tpu.memory_space<smem>>
    %c6_i32 = arith.constant 6 : i32
    %289 = vector.broadcast %c6_i32 : i32 to vector<2x8xi32>
    %290 = arith.cmpi eq, %226, %289 : vector<2x8xi32>
    %c1_i32_150 = arith.constant 1 : i32
    %291 = arith.subi %288, %c1_i32_150 : i32
    %292 = arith.sitofp %291 : i32 to f32
    %cst_151 = arith.constant 1.000000e+09 : f32
    %293 = arith.mulf %292, %cst_151 : f32
    %cst_152 = arith.constant 0.000000e+00 : f32
    %294 = vector.broadcast %293 : f32 to vector<2x8xf32>
    %295 = vector.broadcast %cst_152 : f32 to vector<2x8xf32>
    %296 = arith.select %290, %294, %295 : vector<2x8xi1>, vector<2x8xf32>
    %297 = arith.addf %287, %296 : vector<2x8xf32>
    %c7_153 = arith.constant 7 : index
    %298 = memref.load %arg2[%c7_153] : memref<16xi32, #tpu.memory_space<smem>>
    %c7_i32 = arith.constant 7 : i32
    %299 = vector.broadcast %c7_i32 : i32 to vector<2x8xi32>
    %300 = arith.cmpi eq, %226, %299 : vector<2x8xi32>
    %c1_i32_154 = arith.constant 1 : i32
    %301 = arith.subi %298, %c1_i32_154 : i32
    %302 = arith.sitofp %301 : i32 to f32
    %cst_155 = arith.constant 1.000000e+09 : f32
    %303 = arith.mulf %302, %cst_155 : f32
    %cst_156 = arith.constant 0.000000e+00 : f32
    %304 = vector.broadcast %303 : f32 to vector<2x8xf32>
    %305 = vector.broadcast %cst_156 : f32 to vector<2x8xf32>
    %306 = arith.select %300, %304, %305 : vector<2x8xi1>, vector<2x8xf32>
    %307 = arith.addf %297, %306 : vector<2x8xf32>
    %c8_157 = arith.constant 8 : index
    %308 = memref.load %arg2[%c8_157] : memref<16xi32, #tpu.memory_space<smem>>
    %c8_i32_158 = arith.constant 8 : i32
    %309 = vector.broadcast %c8_i32_158 : i32 to vector<2x8xi32>
    %310 = arith.cmpi eq, %226, %309 : vector<2x8xi32>
    %c1_i32_159 = arith.constant 1 : i32
    %311 = arith.subi %308, %c1_i32_159 : i32
    %312 = arith.sitofp %311 : i32 to f32
    %cst_160 = arith.constant 1.000000e+09 : f32
    %313 = arith.mulf %312, %cst_160 : f32
    %cst_161 = arith.constant 0.000000e+00 : f32
    %314 = vector.broadcast %313 : f32 to vector<2x8xf32>
    %315 = vector.broadcast %cst_161 : f32 to vector<2x8xf32>
    %316 = arith.select %310, %314, %315 : vector<2x8xi1>, vector<2x8xf32>
    %317 = arith.addf %307, %316 : vector<2x8xf32>
    %c9_162 = arith.constant 9 : index
    %318 = memref.load %arg2[%c9_162] : memref<16xi32, #tpu.memory_space<smem>>
    %c9_i32 = arith.constant 9 : i32
    %319 = vector.broadcast %c9_i32 : i32 to vector<2x8xi32>
    %320 = arith.cmpi eq, %226, %319 : vector<2x8xi32>
    %c1_i32_163 = arith.constant 1 : i32
    %321 = arith.subi %318, %c1_i32_163 : i32
    %322 = arith.sitofp %321 : i32 to f32
    %cst_164 = arith.constant 1.000000e+09 : f32
    %323 = arith.mulf %322, %cst_164 : f32
    %cst_165 = arith.constant 0.000000e+00 : f32
    %324 = vector.broadcast %323 : f32 to vector<2x8xf32>
    %325 = vector.broadcast %cst_165 : f32 to vector<2x8xf32>
    %326 = arith.select %320, %324, %325 : vector<2x8xi1>, vector<2x8xf32>
    %327 = arith.addf %317, %326 : vector<2x8xf32>
    %c10_166 = arith.constant 10 : index
    %328 = memref.load %arg2[%c10_166] : memref<16xi32, #tpu.memory_space<smem>>
    %c10_i32 = arith.constant 10 : i32
    %329 = vector.broadcast %c10_i32 : i32 to vector<2x8xi32>
    %330 = arith.cmpi eq, %226, %329 : vector<2x8xi32>
    %c1_i32_167 = arith.constant 1 : i32
    %331 = arith.subi %328, %c1_i32_167 : i32
    %332 = arith.sitofp %331 : i32 to f32
    %cst_168 = arith.constant 1.000000e+09 : f32
    %333 = arith.mulf %332, %cst_168 : f32
    %cst_169 = arith.constant 0.000000e+00 : f32
    %334 = vector.broadcast %333 : f32 to vector<2x8xf32>
    %335 = vector.broadcast %cst_169 : f32 to vector<2x8xf32>
    %336 = arith.select %330, %334, %335 : vector<2x8xi1>, vector<2x8xf32>
    %337 = arith.addf %327, %336 : vector<2x8xf32>
    %c11_170 = arith.constant 11 : index
    %338 = memref.load %arg2[%c11_170] : memref<16xi32, #tpu.memory_space<smem>>
    %c11_i32 = arith.constant 11 : i32
    %339 = vector.broadcast %c11_i32 : i32 to vector<2x8xi32>
    %340 = arith.cmpi eq, %226, %339 : vector<2x8xi32>
    %c1_i32_171 = arith.constant 1 : i32
    %341 = arith.subi %338, %c1_i32_171 : i32
    %342 = arith.sitofp %341 : i32 to f32
    %cst_172 = arith.constant 1.000000e+09 : f32
    %343 = arith.mulf %342, %cst_172 : f32
    %cst_173 = arith.constant 0.000000e+00 : f32
    %344 = vector.broadcast %343 : f32 to vector<2x8xf32>
    %345 = vector.broadcast %cst_173 : f32 to vector<2x8xf32>
    %346 = arith.select %340, %344, %345 : vector<2x8xi1>, vector<2x8xf32>
    %347 = arith.addf %337, %346 : vector<2x8xf32>
    %c12_174 = arith.constant 12 : index
    %348 = memref.load %arg2[%c12_174] : memref<16xi32, #tpu.memory_space<smem>>
    %c12_i32 = arith.constant 12 : i32
    %349 = vector.broadcast %c12_i32 : i32 to vector<2x8xi32>
    %350 = arith.cmpi eq, %226, %349 : vector<2x8xi32>
    %c1_i32_175 = arith.constant 1 : i32
    %351 = arith.subi %348, %c1_i32_175 : i32
    %352 = arith.sitofp %351 : i32 to f32
    %cst_176 = arith.constant 1.000000e+09 : f32
    %353 = arith.mulf %352, %cst_176 : f32
    %cst_177 = arith.constant 0.000000e+00 : f32
    %354 = vector.broadcast %353 : f32 to vector<2x8xf32>
    %355 = vector.broadcast %cst_177 : f32 to vector<2x8xf32>
    %356 = arith.select %350, %354, %355 : vector<2x8xi1>, vector<2x8xf32>
    %357 = arith.addf %347, %356 : vector<2x8xf32>
    %c13_178 = arith.constant 13 : index
    %358 = memref.load %arg2[%c13_178] : memref<16xi32, #tpu.memory_space<smem>>
    %c13_i32 = arith.constant 13 : i32
    %359 = vector.broadcast %c13_i32 : i32 to vector<2x8xi32>
    %360 = arith.cmpi eq, %226, %359 : vector<2x8xi32>
    %c1_i32_179 = arith.constant 1 : i32
    %361 = arith.subi %358, %c1_i32_179 : i32
    %362 = arith.sitofp %361 : i32 to f32
    %cst_180 = arith.constant 1.000000e+09 : f32
    %363 = arith.mulf %362, %cst_180 : f32
    %cst_181 = arith.constant 0.000000e+00 : f32
    %364 = vector.broadcast %363 : f32 to vector<2x8xf32>
    %365 = vector.broadcast %cst_181 : f32 to vector<2x8xf32>
    %366 = arith.select %360, %364, %365 : vector<2x8xi1>, vector<2x8xf32>
    %367 = arith.addf %357, %366 : vector<2x8xf32>
    %c14_182 = arith.constant 14 : index
    %368 = memref.load %arg2[%c14_182] : memref<16xi32, #tpu.memory_space<smem>>
    %c14_i32 = arith.constant 14 : i32
    %369 = vector.broadcast %c14_i32 : i32 to vector<2x8xi32>
    %370 = arith.cmpi eq, %226, %369 : vector<2x8xi32>
    %c1_i32_183 = arith.constant 1 : i32
    %371 = arith.subi %368, %c1_i32_183 : i32
    %372 = arith.sitofp %371 : i32 to f32
    %cst_184 = arith.constant 1.000000e+09 : f32
    %373 = arith.mulf %372, %cst_184 : f32
    %cst_185 = arith.constant 0.000000e+00 : f32
    %374 = vector.broadcast %373 : f32 to vector<2x8xf32>
    %375 = vector.broadcast %cst_185 : f32 to vector<2x8xf32>
    %376 = arith.select %370, %374, %375 : vector<2x8xi1>, vector<2x8xf32>
    %377 = arith.addf %367, %376 : vector<2x8xf32>
    %c15_186 = arith.constant 15 : index
    %378 = memref.load %arg2[%c15_186] : memref<16xi32, #tpu.memory_space<smem>>
    %c15_i32 = arith.constant 15 : i32
    %379 = vector.broadcast %c15_i32 : i32 to vector<2x8xi32>
    %380 = arith.cmpi eq, %226, %379 : vector<2x8xi32>
    %c1_i32_187 = arith.constant 1 : i32
    %381 = arith.subi %378, %c1_i32_187 : i32
    %382 = arith.sitofp %381 : i32 to f32
    %cst_188 = arith.constant 1.000000e+09 : f32
    %383 = arith.mulf %382, %cst_188 : f32
    %cst_189 = arith.constant 0.000000e+00 : f32
    %384 = vector.broadcast %383 : f32 to vector<2x8xf32>
    %385 = vector.broadcast %cst_189 : f32 to vector<2x8xf32>
    %386 = arith.select %380, %384, %385 : vector<2x8xi1>, vector<2x8xf32>
    %387 = arith.addf %377, %386 : vector<2x8xf32>
    %388 = vector.extract_strided_slice %219 {offsets = [0, 0], sizes = [2, 16], strides = [1, 1]} : vector<2x32xf32> to vector<2x16xf32>
    %389 = vector.extract_strided_slice %216 {offsets = [0, 0, 0], sizes = [2, 8, 16], strides = [1, 1, 1]} : vector<2x8x32xf32> to vector<2x8x16xf32>
    %390 = vector.extract_strided_slice %217 {offsets = [0, 0, 0], sizes = [2, 8, 16], strides = [1, 1, 1]} : vector<2x8x32xf32> to vector<2x8x16xf32>
    %391 = vector.shape_cast %388 : vector<2x16xf32> to vector<2x1x16xf32>
    %392 = vector.broadcast %391 : vector<2x1x16xf32> to vector<2x8x16xf32>
    %393 = arith.mulf %392, %389 : vector<2x8x16xf32>
    %cst_190 = arith.constant dense<0.000000e+00> : vector<2x8xf32>
    %394 = vector.multi_reduction <add>, %393, %cst_190 [2] : vector<2x8x16xf32> to vector<2x8xf32>
    %cst_191 = arith.constant 2.500000e-01 : f32
    %395 = vector.broadcast %cst_191 : f32 to vector<2x8xf32>
    %396 = arith.mulf %394, %395 : vector<2x8xf32>
    %397 = arith.addf %396, %387 : vector<2x8xf32>
    %cst_192 = arith.constant dense<0xFF800000> : vector<2xf32>
    %398 = vector.multi_reduction <maximumf>, %397, %cst_192 [1] : vector<2x8xf32> to vector<2xf32>
    %399 = vector.shape_cast %398 : vector<2xf32> to vector<2x1xf32>
    %400 = vector.broadcast %399 : vector<2x1xf32> to vector<2x8xf32>
    %401 = arith.subf %397, %400 : vector<2x8xf32>
    %402 = math.exp %401 : vector<2x8xf32>
    %cst_193 = arith.constant dense<0.000000e+00> : vector<2xf32>
    %403 = vector.multi_reduction <add>, %402, %cst_193 [1] : vector<2x8xf32> to vector<2xf32>
    %404 = vector.shape_cast %403 : vector<2xf32> to vector<2x1xf32>
    %405 = tpu.reciprocal %404 {approx = true} : vector<2x1xf32> -> vector<2x1xf32>
    %406 = vector.broadcast %405 : vector<2x1xf32> to vector<2x8xf32>
    %407 = arith.mulf %402, %406 : vector<2x8xf32>
    %408 = vector.shape_cast %407 : vector<2x8xf32> to vector<2x8x1xf32>
    %409 = vector.broadcast %408 : vector<2x8x1xf32> to vector<2x8x16xf32>
    %410 = arith.mulf %409, %390 : vector<2x8x16xf32>
    %cst_194 = arith.constant dense<0.000000e+00> : vector<2x16xf32>
    %411 = vector.multi_reduction <add>, %410, %cst_194 [1] : vector<2x8x16xf32> to vector<2x16xf32>
    %412 = vector.extract_strided_slice %219 {offsets = [0, 16], sizes = [2, 16], strides = [1, 1]} : vector<2x32xf32> to vector<2x16xf32>
    %413 = vector.extract_strided_slice %216 {offsets = [0, 0, 16], sizes = [2, 8, 16], strides = [1, 1, 1]} : vector<2x8x32xf32> to vector<2x8x16xf32>
    %414 = vector.extract_strided_slice %217 {offsets = [0, 0, 16], sizes = [2, 8, 16], strides = [1, 1, 1]} : vector<2x8x32xf32> to vector<2x8x16xf32>
    %415 = vector.shape_cast %412 : vector<2x16xf32> to vector<2x1x16xf32>
    %416 = vector.broadcast %415 : vector<2x1x16xf32> to vector<2x8x16xf32>
    %417 = arith.mulf %416, %413 : vector<2x8x16xf32>
    %cst_195 = arith.constant dense<0.000000e+00> : vector<2x8xf32>
    %418 = vector.multi_reduction <add>, %417, %cst_195 [2] : vector<2x8x16xf32> to vector<2x8xf32>
    %cst_196 = arith.constant 2.500000e-01 : f32
    %419 = vector.broadcast %cst_196 : f32 to vector<2x8xf32>
    %420 = arith.mulf %418, %419 : vector<2x8xf32>
    %421 = arith.addf %420, %387 : vector<2x8xf32>
    %cst_197 = arith.constant dense<0xFF800000> : vector<2xf32>
    %422 = vector.multi_reduction <maximumf>, %421, %cst_197 [1] : vector<2x8xf32> to vector<2xf32>
    %423 = vector.shape_cast %422 : vector<2xf32> to vector<2x1xf32>
    %424 = vector.broadcast %423 : vector<2x1xf32> to vector<2x8xf32>
    %425 = arith.subf %421, %424 : vector<2x8xf32>
    %426 = math.exp %425 : vector<2x8xf32>
    %cst_198 = arith.constant dense<0.000000e+00> : vector<2xf32>
    %427 = vector.multi_reduction <add>, %426, %cst_198 [1] : vector<2x8xf32> to vector<2xf32>
    %428 = vector.shape_cast %427 : vector<2xf32> to vector<2x1xf32>
    %429 = tpu.reciprocal %428 {approx = true} : vector<2x1xf32> -> vector<2x1xf32>
    %430 = vector.broadcast %429 : vector<2x1xf32> to vector<2x8xf32>
    %431 = arith.mulf %426, %430 : vector<2x8xf32>
    %432 = vector.shape_cast %431 : vector<2x8xf32> to vector<2x8x1xf32>
    %433 = vector.broadcast %432 : vector<2x8x1xf32> to vector<2x8x16xf32>
    %434 = arith.mulf %433, %414 : vector<2x8x16xf32>
    %cst_199 = arith.constant dense<0.000000e+00> : vector<2x16xf32>
    %435 = vector.multi_reduction <add>, %434, %cst_199 [1] : vector<2x8x16xf32> to vector<2x16xf32>
    %436 = tpu.concatenate %411, %435 in 1 : vector<2x16xf32>, vector<2x16xf32> -> vector<2x32xf32>
    %c32 = arith.constant 32 : index
    %c0_200 = arith.constant 0 : index
    %437 = vector.load %arg4[%c32, %c0_200] : memref<192x128xbf16, #tpu.memory_space<vmem>>, vector<32x32xbf16>
    %438 = arith.truncf %436 : vector<2x32xf32> to vector<2x32xbf16>
    %cst_201 = arith.constant dense<0.000000e+00> : vector<2x32xf32>
    %439 = tpu.matmul %438, %437, %cst_201 {dimension_numbers = #tpu.dot_dimension_numbers<[1], [0], [0], [1], [0, 0, 1, 1], [], []>} : vector<2x32xbf16>, vector<32x32xbf16>, vector<2x32xf32> -> vector<2x32xf32>
    %c3_202 = arith.constant 3 : index
    %c0_203 = arith.constant 0 : index
    %440 = vector.load %arg5[%c3_202, %c0_203] : memref<16x128xf32, #tpu.memory_space<vmem>>, vector<1x32xf32>
    %441 = vector.broadcast %440 : vector<1x32xf32> to vector<2x32xf32>
    %442 = arith.addf %439, %441 : vector<2x32xf32>
    %443 = arith.addf %221, %442 : vector<2x32xf32>
    %c4_204 = arith.constant 4 : index
    %c0_205 = arith.constant 0 : index
    %444 = vector.load %arg5[%c4_204, %c0_205] : memref<16x128xf32, #tpu.memory_space<vmem>>, vector<1x32xf32>
    %c5_206 = arith.constant 5 : index
    %c0_207 = arith.constant 0 : index
    %445 = vector.load %arg5[%c5_206, %c0_207] : memref<16x128xf32, #tpu.memory_space<vmem>>, vector<1x32xf32>
    %cst_208 = arith.constant dense<0.000000e+00> : vector<2xf32>
    %446 = vector.multi_reduction <add>, %443, %cst_208 [1] : vector<2x32xf32> to vector<2xf32>
    %447 = vector.shape_cast %446 : vector<2xf32> to vector<2x1xf32>
    %cst_209 = arith.constant 3.200000e+01 : f32
    %448 = vector.broadcast %cst_209 : f32 to vector<2x1xf32>
    %449 = arith.divf %447, %448 : vector<2x1xf32>
    %450 = vector.broadcast %449 : vector<2x1xf32> to vector<2x32xf32>
    %451 = arith.subf %443, %450 : vector<2x32xf32>
    %452 = arith.mulf %451, %451 : vector<2x32xf32>
    %cst_210 = arith.constant dense<0.000000e+00> : vector<2xf32>
    %453 = vector.multi_reduction <add>, %452, %cst_210 [1] : vector<2x32xf32> to vector<2xf32>
    %454 = vector.shape_cast %453 : vector<2xf32> to vector<2x1xf32>
    %cst_211 = arith.constant 3.200000e+01 : f32
    %455 = vector.broadcast %cst_211 : f32 to vector<2x1xf32>
    %456 = arith.divf %454, %455 : vector<2x1xf32>
    %457 = vector.broadcast %449 : vector<2x1xf32> to vector<2x32xf32>
    %458 = arith.subf %443, %457 : vector<2x32xf32>
    %cst_212 = arith.constant 9.99999996E-13 : f32
    %459 = vector.broadcast %cst_212 : f32 to vector<2x1xf32>
    %460 = arith.addf %456, %459 : vector<2x1xf32>
    %461 = math.rsqrt %460 : vector<2x1xf32>
    %462 = vector.broadcast %461 : vector<2x1xf32> to vector<2x32xf32>
    %463 = arith.mulf %458, %462 : vector<2x32xf32>
    %464 = vector.broadcast %444 : vector<1x32xf32> to vector<2x32xf32>
    %465 = arith.mulf %463, %464 : vector<2x32xf32>
    %466 = vector.broadcast %445 : vector<1x32xf32> to vector<2x32xf32>
    %467 = arith.addf %465, %466 : vector<2x32xf32>
    %c64 = arith.constant 64 : index
    %c0_213 = arith.constant 0 : index
    %468 = vector.load %arg4[%c64, %c0_213] : memref<192x128xbf16, #tpu.memory_space<vmem>>, vector<32x64xbf16>
    %469 = arith.truncf %467 : vector<2x32xf32> to vector<2x32xbf16>
    %cst_214 = arith.constant dense<0.000000e+00> : vector<2x64xf32>
    %470 = tpu.matmul %469, %468, %cst_214 {dimension_numbers = #tpu.dot_dimension_numbers<[1], [0], [0], [1], [0, 0, 1, 1], [], []>} : vector<2x32xbf16>, vector<32x64xbf16>, vector<2x64xf32> -> vector<2x64xf32>
    %c6_215 = arith.constant 6 : index
    %c0_216 = arith.constant 0 : index
    %471 = vector.load %arg5[%c6_215, %c0_216] : memref<16x128xf32, #tpu.memory_space<vmem>>, vector<1x64xf32>
    %472 = vector.broadcast %471 : vector<1x64xf32> to vector<2x64xf32>
    %473 = arith.addf %470, %472 : vector<2x64xf32>
    %474 = arith.mulf %473, %473 : vector<2x64xf32>
    %475 = arith.mulf %473, %474 : vector<2x64xf32>
    %cst_217 = arith.constant 4.471500e-02 : f32
    %476 = vector.broadcast %cst_217 : f32 to vector<2x64xf32>
    %477 = arith.mulf %476, %475 : vector<2x64xf32>
    %478 = arith.addf %473, %477 : vector<2x64xf32>
    %cst_218 = arith.constant 0.797884583 : f32
    %479 = vector.broadcast %cst_218 : f32 to vector<2x64xf32>
    %480 = arith.mulf %479, %478 : vector<2x64xf32>
    %481 = math.tanh %480 : vector<2x64xf32>
    %cst_219 = arith.constant 1.000000e+00 : f32
    %482 = vector.broadcast %cst_219 : f32 to vector<2x64xf32>
    %483 = arith.addf %482, %481 : vector<2x64xf32>
    %cst_220 = arith.constant 5.000000e-01 : f32
    %484 = vector.broadcast %cst_220 : f32 to vector<2x64xf32>
    %485 = arith.mulf %484, %483 : vector<2x64xf32>
    %486 = arith.mulf %473, %485 : vector<2x64xf32>
    %c96 = arith.constant 96 : index
    %c0_221 = arith.constant 0 : index
    %487 = vector.load %arg4[%c96, %c0_221] : memref<192x128xbf16, #tpu.memory_space<vmem>>, vector<64x32xbf16>
    %488 = arith.truncf %486 : vector<2x64xf32> to vector<2x64xbf16>
    %cst_222 = arith.constant dense<0.000000e+00> : vector<2x32xf32>
    %489 = tpu.matmul %488, %487, %cst_222 {dimension_numbers = #tpu.dot_dimension_numbers<[1], [0], [0], [1], [0, 0, 1, 1], [], []>} : vector<2x64xbf16>, vector<64x32xbf16>, vector<2x32xf32> -> vector<2x32xf32>
    %c7_223 = arith.constant 7 : index
    %c0_224 = arith.constant 0 : index
    %490 = vector.load %arg5[%c7_223, %c0_224] : memref<16x128xf32, #tpu.memory_space<vmem>>, vector<1x32xf32>
    %491 = vector.broadcast %490 : vector<1x32xf32> to vector<2x32xf32>
    %492 = arith.addf %489, %491 : vector<2x32xf32>
    %493 = arith.addf %467, %492 : vector<2x32xf32>
    %c8_225 = arith.constant 8 : index
    %c0_226 = arith.constant 0 : index
    %494 = vector.load %arg5[%c8_225, %c0_226] : memref<16x128xf32, #tpu.memory_space<vmem>>, vector<1x32xf32>
    %c9_227 = arith.constant 9 : index
    %c0_228 = arith.constant 0 : index
    %495 = vector.load %arg5[%c9_227, %c0_228] : memref<16x128xf32, #tpu.memory_space<vmem>>, vector<1x32xf32>
    %cst_229 = arith.constant dense<0.000000e+00> : vector<2xf32>
    %496 = vector.multi_reduction <add>, %493, %cst_229 [1] : vector<2x32xf32> to vector<2xf32>
    %497 = vector.shape_cast %496 : vector<2xf32> to vector<2x1xf32>
    %cst_230 = arith.constant 3.200000e+01 : f32
    %498 = vector.broadcast %cst_230 : f32 to vector<2x1xf32>
    %499 = arith.divf %497, %498 : vector<2x1xf32>
    %500 = vector.broadcast %499 : vector<2x1xf32> to vector<2x32xf32>
    %501 = arith.subf %493, %500 : vector<2x32xf32>
    %502 = arith.mulf %501, %501 : vector<2x32xf32>
    %cst_231 = arith.constant dense<0.000000e+00> : vector<2xf32>
    %503 = vector.multi_reduction <add>, %502, %cst_231 [1] : vector<2x32xf32> to vector<2xf32>
    %504 = vector.shape_cast %503 : vector<2xf32> to vector<2x1xf32>
    %cst_232 = arith.constant 3.200000e+01 : f32
    %505 = vector.broadcast %cst_232 : f32 to vector<2x1xf32>
    %506 = arith.divf %504, %505 : vector<2x1xf32>
    %507 = vector.broadcast %499 : vector<2x1xf32> to vector<2x32xf32>
    %508 = arith.subf %493, %507 : vector<2x32xf32>
    %cst_233 = arith.constant 9.99999996E-13 : f32
    %509 = vector.broadcast %cst_233 : f32 to vector<2x1xf32>
    %510 = arith.addf %506, %509 : vector<2x1xf32>
    %511 = math.rsqrt %510 : vector<2x1xf32>
    %512 = vector.broadcast %511 : vector<2x1xf32> to vector<2x32xf32>
    %513 = arith.mulf %508, %512 : vector<2x32xf32>
    %514 = vector.broadcast %494 : vector<1x32xf32> to vector<2x32xf32>
    %515 = arith.mulf %513, %514 : vector<2x32xf32>
    %516 = vector.broadcast %495 : vector<1x32xf32> to vector<2x32xf32>
    %517 = arith.addf %515, %516 : vector<2x32xf32>
    %c160 = arith.constant 160 : index
    %c0_234 = arith.constant 0 : index
    %518 = vector.load %arg4[%c160, %c0_234] : memref<192x128xbf16, #tpu.memory_space<vmem>>, vector<32x16xbf16>
    %519 = arith.truncf %517 : vector<2x32xf32> to vector<2x32xbf16>
    %cst_235 = arith.constant dense<0.000000e+00> : vector<2x16xf32>
    %520 = tpu.matmul %519, %518, %cst_235 {dimension_numbers = #tpu.dot_dimension_numbers<[1], [0], [0], [1], [0, 0, 1, 1], [], []>} : vector<2x32xbf16>, vector<32x16xbf16>, vector<2x16xf32> -> vector<2x16xf32>
    %c10_236 = arith.constant 10 : index
    %c0_237 = arith.constant 0 : index
    %521 = vector.load %arg5[%c10_236, %c0_237] : memref<16x128xf32, #tpu.memory_space<vmem>>, vector<1x16xf32>
    %522 = vector.broadcast %521 : vector<1x16xf32> to vector<2x16xf32>
    %523 = arith.addf %520, %522 : vector<2x16xf32>
    %cst_238 = arith.constant 0.000000e+00 : f32
    %524 = vector.broadcast %cst_238 : f32 to vector<2x16xf32>
    %525 = arith.maximumf %523, %524 : vector<2x16xf32>
    %c11_239 = arith.constant 11 : index
    %c0_240 = arith.constant 0 : index
    %526 = vector.load %arg5[%c11_239, %c0_240] : memref<16x128xf32, #tpu.memory_space<vmem>>, vector<1x16xf32>
    %cst_241 = arith.constant dense<0.000000e+00> : vector<1x2xf32>
    %527 = tpu.matmul %526, %525, %cst_241 {dimension_numbers = #tpu.dot_dimension_numbers<[1], [1], [0], [0], [0, 0, 1, 0], [], []>} : vector<1x16xf32>, vector<2x16xf32>, vector<1x2xf32> -> vector<1x2xf32>
    %c12_242 = arith.constant 12 : index
    %c0_243 = arith.constant 0 : index
    %528 = vector.load %arg5[%c12_242, %c0_243] : memref<16x128xf32, #tpu.memory_space<vmem>>, vector<1x1xf32>
    %529 = vector.broadcast %528 : vector<1x1xf32> to vector<1x2xf32>
    %530 = arith.addf %527, %529 : vector<1x2xf32>
    %cst_244 = arith.constant 0.000000e+00 : f32
    %531 = vector.broadcast %cst_244 : f32 to vector<1x126xf32>
    %532 = tpu.concatenate %530, %531 in 1 : vector<1x2xf32>, vector<1x126xf32> -> vector<1x128xf32>
    %c0_245 = arith.constant 0 : index
    %c0_246 = arith.constant 0 : index
    %533 = vector.load %arg6[%c0_245, %c0_246] : memref<1x128xf32, #tpu.memory_space<vmem>>, vector<1x128xf32>
    tpu.vector_store %arg6[%c0_245, %c0_246], %532 {strides = array<i32>} : memref<1x128xf32, #tpu.memory_space<vmem>>, vector<1x128xf32>,
    return
  }
}

</mosaic_0001>

<bundles_post_ra>
// kernel: entailment_forward.1
= control target key start
LH: loop header
LB: loop body
LE: loop exit
PB: predicated region body
PF: predicated region fallthrough
CT: control target
= control target key end

     0   :  { %11 = vsyncpa [#allocation4], 0  ;;  %s2211_s0 = inlined_call_operand.vmem [shape: s32[16], index: 0, kind: input, shape index: {}]   ;;  %s2212_s1 = inlined_call_operand.vmem [shape: s32[16], index: 1, kind: input, shape index: {}]   ;;  %s2213_s2 = inlined_call_operand.vmem [shape: s32[16], index: 2, kind: input, shape index: {}]   ;;  %s2214_s3 = inlined_call_operand.vmem [shape: f32[60,1,32], index: 3, kind: input, shape index: {}]   ;;  %s2215_s4 = inlined_call_operand.vmem [shape: bf16[192,128], index: 4, kind: input, shape index: {}]   ;;  %s2216_s5 = inlined_call_operand.hbm [shape: f32[16,128], index: 5, kind: input, shape index: {}]   ;;  %s2217_s6 = inlined_call_operand.vmem [shape: f32[1,128], index: 6, kind: output, shape index: {}]  }
   0x1   :  { %12 = vsyncpa [#allocation6], 0  ;;  %s30_s23 = sshll.u32 %s2212_s1, 4  ;;  %s31_s23 = int_to_ptr.vmem [resolvable:$true] %s30_s23 }
   0x2   :  { %13 = vsyncpa [#allocation3], 0  ;;  %s20_s26 = sshll.u32 %s2211_s0, 4  ;;  %s1691_s27 = scalar_lea.vmem %s31_s23, 16  ;;  %s21_s26 = int_to_ptr.vmem [resolvable:$true] %s20_s26 }
   0x3   :  { %p1692_p0 = scmp.ne.s32.totalorder %s31_s23, %s1691_s27  ;;  %p1696_p1 = scmp.lt.s32.totalorder %s31_s23, %s31_s23 }
   0x4   :  { %p1697_p2 = scmp.lt.s32.totalorder %s1691_s27, %s1691_s27 }
   0x6   :  { %p1698_p3 = por %p1697_p2, %p1696_p1 }
   0x8   :  { %p1699_p4 = pnand %p1698_p3, %p1692_p0 }
   0xa   :  { %1702 = shalt.err (!%p1699_p4)
}
   0xb   :  { %s1753_s28 = smov [#allocation5]   ;;  %s1703_s29 = scalar_lea.vmem %s21_s26, 16 }
   0xc   :  { %33 = dma.vmem_to_smem %s31_s23, 16, %s1753_s28, [#allocation6]  }
   0xd   :  { %p1704_p5 = scmp.ne.s32.totalorder %s21_s26, %s1703_s29  ;;  %p1708_p6 = scmp.lt.s32.totalorder %s21_s26, %s21_s26 }
   0xe   :  { %p1709_p7 = scmp.lt.s32.totalorder %s1703_s29, %s1703_s29 }
  0x10   :  { %p1710_p8 = por %p1709_p7, %p1708_p6 }
  0x12   :  { %p1711_p9 = pnand %p1710_p8, %p1704_p5 }
  0x14   :  { %1714 = shalt.err (!%p1711_p9)
}
  0x15   :  { %s1754_s1 = smov [#allocation2]   ;;  %s40_s7 = sshll.u32 %s2213_s2, 4  ;;  %s41_s7 = int_to_ptr.vmem [resolvable:$true] %s40_s7 }
  0x16   :  { %23 = dma.vmem_to_smem %s21_s26, 16, %s1754_s1, [#allocation4]  }
  0x17   :  { %s1715_s8 = scalar_lea.vmem %s41_s7, 16  ;;  %p1720_p11 = scmp.lt.s32.totalorder %s41_s7, %s41_s7 }
  0x18   :  { %p1716_p10 = scmp.ne.s32.totalorder %s41_s7, %s1715_s8  ;;  %p1721_p12 = scmp.lt.s32.totalorder %s1715_s8, %s1715_s8 }
  0x1a   :  { %p1722_p13 = por %p1721_p12, %p1720_p11 }
  0x1c   :  { %p1723_p0 = pnand %p1722_p13, %p1716_p10 }
  0x1e   :  { %1726 = shalt.err (!%p1723_p0)
}
  0x1f   :  { %s1755_s9 = smov [#allocation7]   ;;  %s1756_s10 = smov [#allocation8]  }
  0x20   :  { %43 = dma.vmem_to_smem %s41_s7, 16, %s1755_s9, [#allocation6]  }
  0x21   :  { %s53_s11 = sshll.u32 %s1756_s10, 4  ;;  %s54_s11 = int_to_ptr.vmem [resolvable:$true] %s53_s11 }
  0x22   :  { %s1735_s12 = scalar_lea.vmem %s54_s11, 256  ;;  %p1740_p2 = scmp.lt.s32.totalorder %s54_s11, %s54_s11 }
  0x23   :  { %p1736_p1 = scmp.ne.s32.totalorder %s54_s11, %s1735_s12  ;;  %p1741_p3 = scmp.lt.s32.totalorder %s1735_s12, %s1735_s12 }
  0x25   :  { %p1742_p4 = por %p1741_p3, %p1740_p2 }
  0x27   :  { %p1743_p5 = pnand %p1742_p4, %p1736_p1 }
  0x29   :  { %1746 = shalt.err (!%p1743_p5)
}
  0x2a   :  { %s1757_s2 = smov 128   ;;  %s1758_s13 = smov 8  }
  0x2b   :  { %59 = dma.hbm_to_vmem [thread:$0]  %s2216_s5, 256, %s54_s11, [#allocation3], %s1757_s2, %s1757_s2, %s1758_s13  }
  0x2c   :  { %1747 = dma.done.wait [#allocation4], 16  }
  0x2d   :  { %1748 = vsyncadd [#allocation4], 4294967280 }
  0x2e   :  { %1749 = dma.done.wait [#allocation6], 32  }
  0x2f   :  { %1750 = vsyncadd [#allocation6], 4294967264 }
  0x30   :  { %1751 = dma.done.wait [#allocation3], 256  }
  0x31   :  { %1752 = vsyncadd [#allocation3], 4294967040 }
  0x32   :  { %72 = sfence }
  0x33   :  { %s74_s16 = sld [smem:[#allocation2]]  ;;  %v203_v0 = vlaneseq  ;;  %vm286_vm0 = vcmask 1040384   ;;  %v1494_v2 = vld [vmem:[%s2214_s3 + $0x34] sm:$0x1]  ;;  %v1502_v3 = vld [vmem:[%s2214_s3 + $0x35] ss:$0 sm:$0xff] }
  0x34   :  { %s77_s17 = sld [smem:[#allocation5]]  ;;  %vm288_vm1 = vcmask 1041408   ;;  %vm290_vm2 = vcmask 1042432   ;;  %vm292_vm3 = vcmask 1043456   ;;  %v1503_v5 = vld [vmem:[%s2214_s3 + $0x36] ss:$0 sm:$0xff]  ;;  %v365_v7 = vsel %vm286_vm0, %v1494_v2, %v1502_v3 }
  0x35   :  { %s1449_s18 = sld [smem:[#allocation2 + $0x1]]  ;;  %v1813_v1 = vshrl.u32 %v203_v0, 7  ;;  %vm294_vm4 = vcmask 1044480   ;;  %v1504_v9 = vld [vmem:[%s2214_s3 + $0x37] ss:$0 sm:$0xff]  ;;  %v366_v12 = vsel %vm288_vm1, %v365_v7, %v1503_v5  ;;  %vm296_vm5 = vcmask 1045504  }
  0x36   :  { %s1450_s19 = sld [smem:[#allocation5 + $0x1]]  ;;  %v1505_v16 = vld [vmem:[%s2214_s3 + $0x38] ss:$0 sm:$0xff]  ;;  %v367_v21 = vsel %vm290_vm2, %v366_v12, %v1504_v9  ;;  %vm298_vm6 = vcmask 1046528   ;;  %v1506_v23 = vld [vmem:[%s2214_s3 + $0x39] ss:$0 sm:$0xff] }
  0x37   :  { %s1815_s20 = sld [smem:[#allocation2 + $0x2]]  ;;  %v1831_v4 = vsub.s32 0, %v1813_v1  ;;  %v368_v29 = vsel %vm292_vm3, %v367_v21, %v1505_v16  ;;  %v1507_v34 = vld [vmem:[%s2214_s3 + $0x3a] ss:$0 sm:$0xff]  ;;  %vm376_vm7 = vcmask 261120   ;;  %vm1760_vm8 = vmmov 0  }
  0x38   :  { %s1823_s24 = sld [smem:[#allocation5 + $0x2]]  ;;  %v369_v40 = vsel %vm294_vm4, %v368_v29, %v1506_v23  ;;  %v1508_v42 = vld [vmem:[%s2214_s3 + $0x3b] ss:$0 sm:$0xff]  ;;  %vm634_vm13 = vcmask 130048  }
  0x39   :  { %s75_s27 = scalar_lea.vmem %s2214_s3, %s74_s16  ;;  %s1828_s28 = sld [smem:[#allocation2 + $0x3]]  ;;  %v370_v48 = vsel %vm296_vm5, %v369_v40, %v1507_v34 }
  0x3a   :  { %v76_v6 = vld [vmem:[%s75_s27] sm:$0x1]  ;;  %s1401_s7 = scalar_lea.vmem %s2214_s3, %s77_s17  ;;  %s1839_s8 = sld [smem:[#allocation5 + $0x3]]  ;;  %v371_v56 = vsel %vm298_vm6, %v370_v48, %v1508_v42  ;;  %v1759_v48 = vmov 0.0  }
  0x3b   :  { %v1448_v8 = vld [vmem:[%s1401_s7 + $0x32] sm:$0x1]  ;;  %s83_s11 = scalar_lea.vmem %s2214_s3, %s1449_s18  ;;  %s1845_s12 = sld [smem:[#allocation2 + $0x4]]  ;;  %1589 = vmatprep.subr.bf16.mxu0 %v1759_v48  ;;  %1593 = vmatprep.mubr.msk.bf16.mxu0 %vm1760_vm8, %v1759_v48 }
  0x3c   :  { %v84_v10 = vld [vmem:[%s83_s11] sm:$0x1]  ;;  %s1404_s16 = scalar_lea.vmem %s2214_s3, %s1450_s19  ;;  %s1853_s17 = sld [smem:[#allocation5 + $0x4]]  ;;  %v81_v13 = vadd.f32 %v1448_v8, %v76_v6  ;;  %1597 = vmatprep.subr.bf16.mxu1 %v1759_v48  ;;  %1601 = vmatprep.mubr.msk.bf16.mxu1 %vm1760_vm8, %v1759_v48 }
  0x3d   :  { %v1451_v11 = vld [vmem:[%s1404_s16 + $0x32] sm:$0x1]  ;;  %s91_s18 = scalar_lea.vmem %s2214_s3, %s1815_s20  ;;  %s1859_s22 = sld [smem:[#allocation2 + $0x5]] }
  0x3e   :  { %v89_v14 = vadd.f32 %v1451_v11, %v84_v10  ;;  %v92_v15 = vld [vmem:[%s91_s18] sm:$0x1]  ;;  %s1407_s19 = scalar_lea.vmem %s2214_s3, %s1823_s24  ;;  %s1866_s26 = sld [smem:[#allocation5 + $0x5]] }
  0x3f   :  { %v1454_v17 = vld [vmem:[%s1407_s19 + $0x32] sm:$0x1]  ;;  %s99_s0 = scalar_lea.vmem %s2214_s3, %s1828_s28  ;;  %s1875_s30 = sld [smem:[#allocation2 + $0x6]] }
  0x40   :  { %v97_v18 = vadd.f32 %v1454_v17, %v92_v15  ;;  %v100_v19 = vld [vmem:[%s99_s0] sm:$0x1]  ;;  %s1410_s24 = scalar_lea.vmem %s2214_s3, %s1839_s8  ;;  %s1881_s10 = sld [smem:[#allocation5 + $0x6]]  ;;  %v206_v20 = vrot.slane %v89_v14, %v1831_v4 }
  0x41   :  { %v1457_v22 = vld [vmem:[%s1410_s24 + $0x32] sm:$0x1]  ;;  %s107_s28 = scalar_lea.vmem %s2214_s3, %s1845_s12  ;;  %s1889_s13 = sld [smem:[#allocation2 + $0x7]] }
  0x42   :  { %v105_v24 = vadd.f32 %v1457_v22, %v100_v19  ;;  %v108_v25 = vld [vmem:[%s107_s28] sm:$0x1]  ;;  %s1413_s21 = scalar_lea.vmem %s2214_s3, %s1853_s17  ;;  %s1898_s5 = sld [smem:[#allocation5 + $0x7]]  ;;  %v212_v26 = vrot.slane %v97_v18, %v1831_v4  ;;  %v287_v27 = vsel %vm286_vm0, %v81_v13, %v206_v20 }
  0x43   :  { %v1460_v28 = vld [vmem:[%s1413_s21 + $0x32] sm:$0x1]  ;;  %s115_s23 = scalar_lea.vmem %s2214_s3, %s1859_s22  ;;  %s1907_s25 = sld [smem:[#allocation2 + $0x8]] }
  0x44   :  { %v113_v30 = vadd.f32 %v1460_v28, %v108_v25  ;;  %v116_v31 = vld [vmem:[%s115_s23] sm:$0x1]  ;;  %s1416_s27 = scalar_lea.vmem %s2214_s3, %s1866_s26  ;;  %v218_v32 = vrot.slane %v105_v24, %v1831_v4  ;;  %v289_v33 = vsel %vm288_vm1, %v287_v27, %v212_v26  ;;  %s1918_s22 = sld [smem:[#allocation5 + $0x8]] }
  0x45   :  { %v1463_v35 = vld [vmem:[%s1416_s27 + $0x32] sm:$0x1]  ;;  %s123_s7 = scalar_lea.vmem %s2214_s3, %s1875_s30  ;;  %s1924_s9 = sld [smem:[#allocation2 + $0x9]] }
  0x46   :  { %v121_v36 = vadd.f32 %v1463_v35, %v116_v31  ;;  %v124_v37 = vld [vmem:[%s123_s7] sm:$0x1]  ;;  %s1419_s11 = scalar_lea.vmem %s2214_s3, %s1881_s10  ;;  %v224_v38 = vrot.slane %v113_v30, %v1831_v4  ;;  %v291_v39 = vsel %vm290_vm2, %v289_v33, %v218_v32  ;;  %s1933_s2 = sld [smem:[#allocation5 + $0x9]] }
  0x47   :  { %v1466_v41 = vld [vmem:[%s1419_s11 + $0x32] sm:$0x1]  ;;  %s131_s14 = scalar_lea.vmem %s2214_s3, %s1889_s13  ;;  %s1942_s10 = sld [smem:[#allocation2 + $0xa]] }
  0x48   :  { %v129_v43 = vadd.f32 %v1466_v41, %v124_v37  ;;  %v132_v44 = vld [vmem:[%s131_s14] sm:$0x1]  ;;  %s1422_s12 = scalar_lea.vmem %s2214_s3, %s1898_s5  ;;  %v230_v45 = vrot.slane %v121_v36, %v1831_v4  ;;  %v293_v46 = vsel %vm292_vm3, %v291_v39, %v224_v38  ;;  %s1950_s18 = sld [smem:[#allocation5 + $0xa]] }
  0x49   :  { %v1469_v47 = vld [vmem:[%s1422_s12 + $0x32] sm:$0x1]  ;;  %s139_s17 = scalar_lea.vmem %s2214_s3, %s1907_s25  ;;  %s1957_s19 = sld [smem:[#allocation2 + $0xb]] }
  0x4a   :  { %v137_v49 = vadd.f32 %v1469_v47, %v132_v44  ;;  %v236_v50 = vrot.slane %v129_v43, %v1831_v4  ;;  %v295_v51 = vsel %vm294_vm4, %v293_v46, %v230_v45  ;;  %v140_v52 = vld [vmem:[%s139_s17] sm:$0x1]  ;;  %s1425_s29 = scalar_lea.vmem %s2214_s3, %s1918_s22  ;;  %s1965_s20 = sld [smem:[#allocation5 + $0xb]]  ;;  %v1657_v47 = vld [vmem:[%s2215_s4 + $0x8] sm:$0xff]  }
  0x4b   :  { %v1472_v53 = vld [vmem:[%s1425_s29 + $0x32] sm:$0x1]  ;;  %s147_s25 = scalar_lea.vmem %s2214_s3, %s1924_s9  ;;  %s1971_s7 = sld [smem:[#allocation2 + $0xc]]  ;;  %1590 = vmatpush3.bf16.msra.mxu0 %v1657_v47 }
  0x4c   :  { %v242_v54 = vrot.slane %v137_v49, %v1831_v4  ;;  %v297_v55 = vsel %vm296_vm5, %v295_v51, %v236_v50  ;;  %v148_v57 = vld [vmem:[%s147_s25] sm:$0x1]  ;;  %s1428_s24 = scalar_lea.vmem %s2214_s3, %s1933_s2  ;;  %s1980_s11 = sld [smem:[#allocation5 + $0xc]]  ;;  %v145_v60 = vadd.f32 %v1472_v53, %v140_v52  ;;  %1591 = vmatprep.subr.bf16.mxu0 %v1759_v48 }
  0x4d   :  { %v1475_v58 = vld [vmem:[%s1428_s24 + $0x32] sm:$0x1]  ;;  %s155_s28 = scalar_lea.vmem %s2214_s3, %s1942_s10  ;;  %s1986_s14 = sld [smem:[#allocation2 + $0xd]]  ;;  %v1658_v49 = vld [vmem:[%s2215_s4] sm:$0xff]  }
  0x4e   :  { %v299_v59 = vsel %vm298_vm6, %v297_v55, %v242_v54  ;;  %v153_v61 = vadd.f32 %v1475_v58, %v148_v57  ;;  %v156_v62 = vld [vmem:[%s155_s28] sm:$0x1]  ;;  %s1431_s2 = scalar_lea.vmem %s2214_s3, %s1950_s18  ;;  %s1486_s16 = sld [smem:[#allocation5 + $0xd]] }
  0x4f   :  { %v372_v63 = vadd.f32 %v371_v56, %v299_v59  ;;  %v1478_v2 = vld [vmem:[%s1431_s2 + $0x32] sm:$0x1]  ;;  %s163_s10 = scalar_lea.vmem %s2214_s3, %s1957_s19  ;;  %s1488_s13 = sld [smem:[#allocation2 + $0xe]]  ;;  %1592 = vmatpush3.bf16.msra.mxu0 %v1658_v49  ;;  %v1509_v58 = vld [vmem:[#allocation8] ss:$0 sm:$0xff] }
  0x50   :  { %v161_v3 = vadd.f32 %v1478_v2, %v156_v62  ;;  %v164_v5 = vld [vmem:[%s163_s10] sm:$0x1]  ;;  %s1434_s5 = scalar_lea.vmem %s2214_s3, %s1965_s20  ;;  %s1489_s27 = sld [smem:[#allocation5 + $0xe]]  ;;  %v248_v6 = vrot.slane %v153_v61, %v1831_v4  ;;  %1605 = vmatprep.subr.bf16.mxu0 %v1759_v48  ;;  %v1510_v62 = vld [vmem:[#allocation8 + $0x1] ss:$0 sm:$0xff] }
  0x51   :  { %v377_v7 = vsel %vm376_vm7, %v372_v63, 0.0  ;;  %v1481_v8 = vld [vmem:[%s1434_s5 + $0x32] sm:$0x1]  ;;  %s171_s1 = scalar_lea.vmem %s2214_s3, %s1971_s7  ;;  %s1491_s0 = sld [smem:[#allocation2 + $0xf]] }
  0x52   :  { %378 = vadd.xlane.f32.xlu0 %v377_v7  ;;  %v169_v9 = vadd.f32 %v1481_v8, %v164_v5  ;;  %v172_v10 = vld [vmem:[%s171_s1] sm:$0x1]  ;;  %s1437_s26 = scalar_lea.vmem %s2214_s3, %s1980_s11  ;;  %s1492_s22 = sld [smem:[#allocation5 + $0xf]]  ;;  %v254_v11 = vrot.slane %v161_v3, %v1831_v4  ;;  %v300_v12 = vsel %vm286_vm0, %v145_v60, %v248_v6  ;;  %v1511_v6 = vld [vmem:[#allocation8 + $0x2] ss:$0 sm:$0xff] }
  0x53   :  { %v1484_v13 = vld [vmem:[%s1437_s26 + $0x32] sm:$0x1]  ;;  %s179_s30 = scalar_lea.vmem %s2214_s3, %s1986_s14  ;;  %s1761_s29 = smov 96  }
  0x54   :  { %v177_v14 = vadd.f32 %v1484_v13, %v172_v10  ;;  %v180_v15 = vld [vmem:[%s179_s30] sm:$0x1]  ;;  %s1440_s28 = scalar_lea.vmem %s2214_s3, %s1486_s16  ;;  %v260_v16 = vrot.slane %v169_v9, %v1831_v4  ;;  %v301_v17 = vsel %vm288_vm1, %v300_v12, %v254_v11  ;;  %s488_s1 = sld [smem:[#allocation7]]  ;;  %v484_v13 = vmul.u32 8, %v1813_v1 }
  0x55   :  { %v1487_v18 = vld [vmem:[%s1440_s28 + $0x32] sm:$0x1]  ;;  %s187_s8 = scalar_lea.vmem %s2214_s3, %s1488_s13  ;;  %s1518_s19 = sld [smem:[#allocation7 + $0x2]] }
  0x56   :  { %v185_v19 = vadd.f32 %v1487_v18, %v180_v15  ;;  %v188_v20 = vld [vmem:[%s187_s8] sm:$0x1]  ;;  %s1443_s14 = scalar_lea.vmem %s2214_s3, %s1489_s27  ;;  %v266_v21 = vrot.slane %v177_v14, %v1831_v4  ;;  %v302_v22 = vsel %vm290_vm2, %v301_v17, %v260_v16  ;;  %v2077_v14 = vand.u32 127, %v203_v0  ;;  %s1522_s7 = sld [smem:[#allocation7 + $0x4]] }
  0x57   :  { %v1490_v23 = vld [vmem:[%s1443_s14 + $0x32] sm:$0x1]  ;;  %s195_s10 = scalar_lea.vmem %s2214_s3, %s1491_s0  ;;  %s1516_s0 = sld [smem:[#allocation7 + $0x1]] }
  0x58   :  { %v193_v24 = vadd.f32 %v1490_v23, %v188_v20  ;;  %v196_v25 = vld [vmem:[%s195_s10] sm:$0x1]  ;;  %s1446_s13 = scalar_lea.vmem %s2214_s3, %s1492_s22  ;;  %v272_v26 = vrot.slane %v185_v19, %v1831_v4  ;;  %v303_v27 = vsel %vm292_vm3, %v302_v22, %v266_v21  ;;  %s1520_s22 = sld [smem:[#allocation7 + $0x3]]  ;;  %v2080_v15 = vadd.s32 %v2077_v14, %v484_v13 }
  0x59   :  { %v1493_v28 = vld [vmem:[%s1446_s13 + $0x32] sm:$0x1]  ;;  %s1524_s8 = sld [smem:[#allocation7 + $0x5]] }
  0x5a   :  { %v201_v29 = vadd.f32 %v1493_v28, %v196_v25  ;;  %v278_v30 = vrot.slane %v193_v24, %v1831_v4  ;;  %v304_v31 = vsel %vm294_vm4, %v303_v27, %v272_v26  ;;  %s1515_s25 = sadd.s32 4294967295, %s488_s1  ;;  %vm489_vm9 = vcmp.eq.s32.totalorder %v2080_v15, 0  ;;  %s1526_s16 = sld [smem:[#allocation7 + $0x6]] }
  0x5b   :  { %s491_s20 = scvt.s32.f32 %s1515_s25  ;;  %s1519_s30 = sadd.s32 4294967295, %s1518_s19  ;;  %vm497_vm10 = vcmp.eq.s32.totalorder %v2080_v15, 1  ;;  %vm505_vm11 = vcmp.eq.s32.totalorder %v2080_v15, 2  ;;  %vm513_vm12 = vcmp.eq.s32.totalorder %v2080_v15, 3  ;;  %vm521_vm14 = vcmp.eq.s32.totalorder %v2080_v15, 4 }
  0x5c   :  { %v284_v32 = vrot.slane %v201_v29, %v1831_v4  ;;  %v305_v33 = vsel %vm296_vm5, %v304_v31, %v278_v30  ;;  %s507_s11 = scvt.s32.f32 %s1519_s30  ;;  %s1523_s14 = sadd.s32 4294967295, %s1522_s7  ;;  %vm529_vm15 = vcmp.eq.s32.totalorder %v2080_v15, 5  ;;  %vm537_vm0 = vcmp.eq.s32.totalorder %v2080_v15, 6 }
  0x5d   :  { %s1517_s26 = sadd.s32 4294967295, %s1516_s0  ;;  %s492_s9 = smul.f32 1e+09, %s491_s20  ;;  %vm545_vm1 = vcmp.eq.s32.totalorder %v2080_v15, 7  ;;  %vm553_vm2 = vcmp.eq.s32.totalorder %v2080_v15, 8  ;;  %vm561_vm3 = vcmp.eq.s32.totalorder %v2080_v15, 9 }
  0x5e   :  { %v306_v34 = vsel %vm298_vm6, %v305_v33, %v284_v32  ;;  %s499_s24 = scvt.s32.f32 %s1517_s26  ;;  %s1521_s15 = sadd.s32 4294967295, %s1520_s22  ;;  %vm569_vm4 = vcmp.eq.s32.totalorder %v2080_v15, 10  ;;  %vm577_vm5 = vcmp.eq.s32.totalorder %v2080_v15, 11  ;;  %vm585_vm6 = vcmp.eq.s32.totalorder %v2080_v15, 12 }
  0x5f   :  { %v373_v35 = vadd.f32 %v371_v56, %v306_v34  ;;  %v493_v16 = vstv %s492_s9  ;;  %s508_s2 = smul.f32 1e+09, %s507_s11  ;;  %s515_s21 = scvt.s32.f32 %s1521_s15 }
  0x60   :  { %s500_s28 = smul.f32 1e+09, %s499_s24  ;;  %v494_v0 = vsel %vm489_vm9, %v493_v16, 0.0  ;;  %s523_s10 = scvt.s32.f32 %s1523_s14  ;;  %vm593_vm9 = vcmp.eq.s32.totalorder %v2080_v15, 13  ;;  %v2115_v16 = vsub.s32 1, %v1813_v1 }
  0x61   :  { %v380_v36 = vsel %vm376_vm7, %v373_v35, 0.0  ;;  %v509_v19 = vstv %s508_s2  ;;  %s516_s12 = smul.f32 1e+09, %s515_s21  ;;  %s1525_s23 = sadd.s32 4294967295, %s1524_s8 }
  0x62   :  { %381 = vadd.xlane.f32.xlu0 %v380_v36  ;;  %v501_v17 = vstv %s500_s28  ;;  %s2085_s17 = sld [smem:[#allocation7 + $0x7]]  ;;  %v510_v21 = vsel %vm505_vm11, %v509_v19, 0.0  ;;  %s524_s13 = smul.f32 1e+09, %s523_s10  ;;  %vm609_vm11 = vcmp.eq.s32.totalorder %v2080_v15, 15 }
  0x63   :  { %v502_v18 = vsel %vm497_vm10, %v501_v17, 0.0  ;;  %v517_v22 = vstv %s516_s12  ;;  %s531_s3 = scvt.s32.f32 %s1525_s23  ;;  %s1527_s5 = sadd.s32 4294967295, %s1526_s16  ;;  %vm601_vm10 = vcmp.eq.s32.totalorder %v2080_v15, 14 }
  0x64   :  { %v503_v20 = vadd.f32 %v502_v18, %v494_v0  ;;  %s2090_s27 = sld [smem:[#allocation7 + $0x8]]  ;;  %v518_v27 = vsel %vm513_vm12, %v517_v22, 0.0  ;;  %v525_v28 = vstv %s524_s13  ;;  %s1762_s1 = smov 112   ;;  %vm678_vm12 = vcmask 1041409  }
  0x65   :  { %s532_s18 = smul.f32 1e+09, %s531_s3  ;;  %s1532_s19 = sld [smem:[#allocation7 + $0x9]]  ;;  %v526_v34 = vsel %vm521_vm14, %v525_v28, 0.0  ;;  %vm681_vm14 = vcmask 58368  }
  0x66   :  { %v511_v25 = vadd.f32 %v510_v21, %v503_v20  ;;  %s1534_s20 = sld [smem:[#allocation7 + $0xa]]  ;;  %v1763_v21 = vmov 0  }
  0x67   :  { %s1536_s9 = sld [smem:[#allocation7 + $0xb]]  ;;  %1651 = vset.pattern.permute.xlu0 %v1763_v21  ;;  %1650 = vset.pattern.permute.xlu1 %v1763_v21 }
  0x68   :  { %s1529_s0 = sadd.s32 4294967295, %s2085_s17  ;;  %v519_v32 = vadd.f32 %v518_v27, %v511_v25  ;;  %s1538_s8 = sld [smem:[#allocation7 + $0xc]] }
  0x69   :  { %s547_s26 = scvt.s32.f32 %s1529_s0  ;;  %s1540_s16 = sld [smem:[#allocation7 + $0xd]] }
  0x6a   :  { %s1531_s22 = sadd.s32 4294967295, %s2090_s27  ;;  %v527_v36 = vadd.f32 %v526_v34, %v519_v32  ;;  %s1542_s17 = sld [smem:[#allocation7 + $0xe]] }
  0x6b   :  { %s548_s24 = smul.f32 1e+09, %s547_s26  ;;  %s555_s30 = scvt.s32.f32 %s1531_s22 }
  0x6c   :  { %s1533_s7 = sadd.s32 4294967295, %s1532_s19  ;;  %s1535_s15 = sadd.s32 4294967295, %s1534_s20 }
  0x6d   :  { %s556_s28 = smul.f32 1e+09, %s555_s30  ;;  %s563_s11 = scvt.s32.f32 %s1533_s7 }
  0x6e   :  { %s571_s21 = scvt.s32.f32 %s1535_s15  ;;  %s1537_s14 = sadd.s32 4294967295, %s1536_s9 }
  0x6f   :  { %s564_s2 = smul.f32 1e+09, %s563_s11  ;;  %s579_s10 = scvt.s32.f32 %s1537_s14 }
  0x70   :  { %s572_s12 = smul.f32 1e+09, %s571_s21  ;;  %s1539_s23 = sadd.s32 4294967295, %s1538_s8 }
  0x71   :  { %v565_v47 = vstv %s564_s2  ;;  %s580_s13 = smul.f32 1e+09, %s579_s10  ;;  %s587_s3 = scvt.s32.f32 %s1539_s23 }
  0x72   :  { %s1544_s27 = sld [smem:[#allocation7 + $0xf]] }
  0xdb   :  { %v379_v37 = vpop.xlane.xlu0 %378 }
  0xdc   :  { %v384_v38 = vmul.f32 0.03125, %v379_v37 }
  0xde   :  { %v386_v39 = vsub.f32 %v372_v63, %v384_v38 }
  0xe0   :  { %v388_v40 = vmul.f32 %v386_v39, %v386_v39 }
  0xe2   :  { %v390_v41 = vsel %vm376_vm7, %v388_v40, 0.0 }
  0xe3   :  { %391 = vadd.xlane.f32.xlu1 %v390_v41  ;;  %v549_v41 = vstv %s548_s24 }
  0xeb   :  { %v382_v42 = vpop.xlane.xlu0 %381 }
  0xec   :  { %v385_v43 = vmul.f32 0.03125, %v382_v42 }
  0xee   :  { %v387_v44 = vsub.f32 %v373_v35, %v385_v43  ;;  %v533_v35 = vstv %s532_s18  ;;  %v550_v43 = vsel %vm545_vm1, %v549_v41, 0.0  ;;  %s588_s18 = smul.f32 1e+09, %s587_s3  ;;  %vm973_vm1 = vcmask 254976  }
  0xef   :  { %v534_v37 = vsel %vm529_vm15, %v533_v35, 0.0  ;;  %vm749_vm15 = vcmask 654848  }
  0xf0   :  { %v389_v45 = vmul.f32 %v387_v44, %v387_v44 }
  0xf2   :  { %v393_v46 = vsel %vm376_vm7, %v389_v45, 0.0 }
  0xf3   :  { %394 = vadd.xlane.f32.xlu1 %v393_v46 }
 0x16c   :  { %v392_v50 = vpop.xlane.xlu1 %391 }
 0x16d   :  { %v396_v51 = vmul.f32 0.03125, %v392_v50  ;;  %v566_v50 = vsel %vm561_vm3, %v565_v47, 0.0  ;;  %vm1390_vm3 = vcmask 15360  }
 0x16f   :  { %v398_v52 = vadd.f32 1e-12, %v396_v51  ;;  %v573_v51 = vstv %s572_s12 }
 0x171   :  { %1669 = vrsqrt.f32 %v398_v52 }
 0x17c   :  { %v395_v53 = vpop.xlane.xlu1 %394 }
 0x17d   :  { %v397_v54 = vmul.f32 0.03125, %v395_v53  ;;  %v574_v53 = vsel %vm569_vm4, %v573_v51, 0.0 }
 0x17e   :  { %v1670_v56 = vpop.eup %1669 }
 0x17f   :  { %v399_v55 = vadd.f32 1e-12, %v397_v54  ;;  %v402_v57 = vmul.f32 %v1670_v56, %v386_v39  ;;  %v535_v39 = vadd.f32 %v534_v37, %v527_v36  ;;  %v581_v54 = vstv %s580_s13 }
 0x180   :  { %v582_v56 = vsel %vm577_vm5, %v581_v54, 0.0  ;;  %v672_v37 = vsub.s32 %v2077_v14, %v1813_v1 }
 0x181   :  { %1671 = vrsqrt.f32 %v399_v55  ;;  %v408_v61 = vmul.f32 %v1509_v58, %v402_v57  ;;  %v589_v57 = vstv %s588_s18 }
 0x183   :  { %v2060_v2 = vadd.f32 %v1510_v62, %v408_v61 }
 0x18e   :  { %v1672_v59 = vpop.eup %1671 }
 0x18f   :  { %v403_v60 = vmul.f32 %v1672_v59, %v387_v44  ;;  %v557_v44 = vstv %s556_s28  ;;  %v590_v59 = vsel %vm585_vm6, %v589_v57, 0.0  ;;  %s1764_s28 = smov 64  }
 0x190   :  { %v558_v46 = vsel %vm553_vm2, %v557_v44, 0.0  ;;  %vm1135_vm2 = vcmask 523264  }
 0x191   :  { %v409_v63 = vmul.f32 %v1509_v58, %v403_v60 }
 0x193   :  { %v2062_v3 = vadd.f32 %v1510_v62, %v409_v63 }
 0x195   :  { %v420_v5 = vpack.c.bf16 %v2062_v3, %v2060_v2 }
 0x197   :  { %1594 = vmatmul.mubr.msk.bf16.vlgmr.msra.gmra.mxu0 %vm376_vm7, %v420_v5 }
 0x198   :  { %1609 = vmatprep.mubr.msk.bf16.mxu0 %vm1760_vm8, %v1759_v48 }
 0x257   :  { %v475_v7 = vpop.f32.mrf.mxu0 }
 0x258   :  { %v2069_v8 = vadd.f32 %v1511_v6, %v475_v7 }
 0x259   :  { %v1595_v9 = vpop.f32.mrf.mxu0 }
 0x25a   :  { %626 = vrot.lane.b32.xlu0 %v2069_v8, %s1761_s29  ;;  %v619_v23 = vrot.slane %v2069_v8, %v1831_v4 }
 0x25b   :  { %v478_v10 = vpop.f32.mrf.mxu0 }
 0x25c   :  { %v2072_v11 = vadd.f32 %v1511_v6, %v478_v10 }
 0x25d   :  { %v1596_v12 = vpop.f32.mrf.mxu0 }
 0x25e   :  { %628 = vrot.lane.b32.xlu1 %v2072_v11, %s1761_s29  ;;  %s539_s29 = scvt.s32.f32 %s1527_s5  ;;  %v623_v30 = vrot.slane %v2072_v11, %v1831_v4  ;;  %s1541_s5 = sadd.s32 4294967295, %s1540_s16 }
 0x260   :  { %s540_s25 = smul.f32 1e+09, %s539_s29  ;;  %s595_s29 = scvt.s32.f32 %s1541_s5 }
 0x262   :  { %v541_v38 = vstv %s540_s25  ;;  %s596_s0 = smul.f32 1e+09, %s595_s29  ;;  %s1545_s25 = sadd.s32 4294967295, %s1544_s27 }
 0x263   :  { %v542_v40 = vsel %vm537_vm0, %v541_v38, 0.0  ;;  %s611_s22 = scvt.s32.f32 %s1545_s25  ;;  %vm867_vm0 = vcmask 786048  }
 0x264   :  { %v543_v42 = vadd.f32 %v542_v40, %v535_v39  ;;  %v597_v60 = vstv %s596_s0 }
 0x265   :  { %v598_v62 = vsel %vm593_vm9, %v597_v60, 0.0  ;;  %s612_s20 = smul.f32 1e+09, %s611_s22 }
 0x266   :  { %v551_v45 = vadd.f32 %v550_v43, %v543_v42 }
 0x267   :  { %v613_v9 = vstv %s612_s20 }
 0x268   :  { %v559_v49 = vadd.f32 %v558_v46, %v551_v45  ;;  %v614_v12 = vsel %vm609_vm11, %v613_v9, 0.0 }
 0x26a   :  { %v567_v52 = vadd.f32 %v566_v50, %v559_v49 }
 0x26c   :  { %v575_v55 = vadd.f32 %v574_v53, %v567_v52 }
 0x26e   :  { %v583_v58 = vadd.f32 %v582_v56, %v575_v55 }
 0x270   :  { %v591_v61 = vadd.f32 %v590_v59, %v583_v58 }
 0x272   :  { %v599_v6 = vadd.f32 %v598_v62, %v591_v61 }
 0x2cc   :  { %v627_v24 = vpop.permute.xlu0 %626 }
 0x2cd   :  { %v632_v26 = vmul.f32 %v627_v24, %v619_v23 }
 0x2cf   :  { %766 = vrot.lane.b32.xlu1 %v632_v26, %s1762_s1  ;;  %v635_v29 = vsel %vm634_vm13, %v632_v26, 0.0 }
 0x2d0   :  { %636 = vadd.xlane.f32.xlu0 %v635_v29  ;;  %v629_v31 = vpop.permute.xlu1 %628 }
 0x2d1   :  { %v2097_v33 = vmul.f32 %v629_v31, %v623_v30 }
 0x2d3   :  { %768 = vrot.lane.b32.xlu1 %v2097_v33, %s1762_s1  ;;  %s1543_s1 = sadd.s32 4294967295, %s1542_s17  ;;  %v638_v63 = vsel %vm634_vm13, %v2097_v33, 0.0 }
 0x2d4   :  { %s603_s19 = scvt.s32.f32 %s1543_s1 }
 0x2d6   :  { %s604_s26 = smul.f32 1e+09, %s603_s19 }
 0x2d8   :  { %v605_v5 = vstv %s604_s26 }
 0x2d9   :  { %v606_v7 = vsel %vm601_vm10, %v605_v5, 0.0 }
 0x2da   :  { %v607_v10 = vadd.f32 %v606_v7, %v599_v6 }
 0x2dc   :  { %v615_v13 = vadd.f32 %v614_v12, %v607_v10 }
 0x2de   :  { %v654_v17 = vrot.slane %v615_v13, %v2115_v16  ;;  %v647_v15 = vrot.slane %v615_v13, %v1831_v4 }
 0x2f7   :  { %639 = vadd.xlane.f32.xlu1 %v638_v63 }
 0x308   :  { %656 = vbcast.lane.b32.xlu1 %v654_v17, 256 }
 0x341   :  { %v767_v0 = vpop.permute.xlu1 %766 }
 0x342   :  { %v772_v18 = vsel %vm634_vm13, %v767_v0, 0.0 }
 0x343   :  { %773 = vadd.xlane.f32.xlu0 %v772_v18 }
 0x345   :  { %v769_v19 = vpop.permute.xlu1 %768 }
 0x346   :  { %v775_v20 = vsel %vm634_vm13, %v769_v19, 0.0 }
 0x347   :  { %776 = vadd.xlane.f32.xlu0 %v775_v20 }
 0x359   :  { %v637_v22 = vpop.xlane.xlu0 %636 }
 0x35a   :  { %v641_v26 = vmul.f32 0.25, %v637_v22 }
 0x35d   :  { %649 = vbcast.lane.b32.xlu0 %v647_v15, 256 }
 0x380   :  { %v640_v24 = vpop.xlane.xlu1 %639 }
 0x381   :  { %v642_v32 = vmul.f32 0.25, %v640_v24 }
 0x384   :  { %v657_v31 = vpop.permute.xlu1 %656 }
 0x385   :  { %v661_v33 = vadd.f32 %v657_v31, %v642_v32 }
 0x3cc   :  { %v774_v23 = vpop.xlane.xlu0 %773 }
 0x3cd   :  { %v778_v27 = vmul.f32 0.25, %v774_v23 }
 0x3d0   :  { %v777_v25 = vpop.xlane.xlu0 %776 }
 0x3d1   :  { %v779_v34 = vmul.f32 0.25, %v777_v25 }
 0x3d3   :  { %v781_v35 = vadd.f32 %v779_v34, %v657_v31  ;;  %v1659_v34 = vld [vmem:[%s2215_s4 + $0x18] sm:$0xff]  }
 0x3d4   :  { %v650_v28 = vpop.permute.xlu0 %649  ;;  %1598 = vmatpush3.bf16.msra.mxu1 %v1659_v34 }
 0x3d5   :  { %v660_v29 = vadd.f32 %v650_v28, %v641_v26  ;;  %v780_v30 = vadd.f32 %v778_v27, %v650_v28  ;;  %1599 = vmatprep.subr.bf16.mxu1 %v1759_v48 }
 0x3d7   :  { %785 = vperm.xlu0 %1651, %v780_v30   ;;  %665 = vperm.xlu1 %1650, %v660_v29  }
 0x3db   :  { %668 = vperm.xlu1 %1650, %v661_v33  }
 0x3df   :  { %788 = vperm.xlu1 %1650, %v781_v35  }
 0x452   :  { %v666_v36 = vpop.permute.xlu1 %665  ;;  %v786_v41 = vpop.permute.xlu0 %785 }
 0x453   :  { %v673_v39 = vrot.slane %v666_v36, %v672_v37  ;;  %v793_v45 = vrot.slane %v786_v41, %v672_v37 }
 0x456   :  { %v669_v38 = vpop.permute.xlu1 %668 }
 0x457   :  { %v677_v40 = vrot.slane %v669_v38, %v672_v37 }
 0x459   :  { %v679_v42 = vsel %vm678_vm12, %v677_v40, %v673_v39 }
 0x45a   :  { %v789_v43 = vpop.permute.xlu1 %788  ;;  %v682_v44 = vsel %vm681_vm14, %v679_v42, -inf }
 0x45b   :  { %v797_v46 = vrot.slane %v789_v43, %v672_v37  ;;  %683 = vmax.xlane.f32.xlu1 %v682_v44 }
 0x45d   :  { %v798_v47 = vsel %vm678_vm12, %v797_v46, %v793_v45 }
 0x45e   :  { %v800_v49 = vsel %vm681_vm14, %v798_v47, -inf }
 0x45f   :  { %801 = vmax.xlane.f32.xlu0 %v800_v49 }
 0x4e4   :  { %v684_v1 = vpop.xlane.xlu1 %683 }
 0x4e5   :  { %v689_v14 = vrot.slane %v684_v1, %v1831_v4  ;;  %v693_v50 = vrot.slane %v684_v1, %v2115_v16 }
 0x4e7   :  { %v696_v51 = vsub.f32 %v660_v29, %v689_v14  ;;  %v697_v52 = vsub.f32 %v661_v33, %v693_v50 }
 0x4e8   :  { %v802_v53 = vpop.xlane.xlu0 %801 }
 0x4e9   :  { %v698_v54 = vmul.f32 1.442695, %v696_v51  ;;  %v700_v55 = vmul.f32 1.442695, %v697_v52  ;;  %v807_v56 = vrot.slane %v802_v53, %v1831_v4  ;;  %v811_v57 = vrot.slane %v802_v53, %v2115_v16 }
 0x4eb   :  { %1673 = vpow2.f32 %v698_v54  ;;  %v814_v58 = vsub.f32 %v780_v30, %v807_v56  ;;  %v815_v59 = vsub.f32 %v781_v35, %v811_v57  ;;  %v1660_v56 = vld [vmem:[%s2215_s4 + $0x10] sm:$0xff]  }
 0x4ec   :  { %1675 = vpow2.f32 %v700_v55  ;;  %1600 = vmatpush3.bf16.msra.mxu1 %v1660_v56 }
 0x4ed   :  { %v816_v60 = vmul.f32 1.442695, %v814_v58  ;;  %v818_v61 = vmul.f32 1.442695, %v815_v59  ;;  %1613 = vmatprep.subr.bf16.mxu1 %v1759_v48 }
 0x4ef   :  { %1677 = vpow2.f32 %v816_v60 }
 0x4f0   :  { %1679 = vpow2.f32 %v818_v61 }
 0x4f8   :  { %v1674_v62 = vpop.eup %1673 }
 0x4f9   :  { %v1676_v63 = vpop.eup %1675  ;;  %705 = vperm.xlu0 %1651, %v1674_v62  }
 0x4fa   :  { %708 = vperm.xlu1 %1650, %v1676_v63  }
 0x4fc   :  { %v1678_v5 = vpop.eup %1677 }
 0x4fd   :  { %v1680_v6 = vpop.eup %1679 }
 0x4fe   :  { %823 = vperm.xlu1 %1650, %v1678_v5   ;;  %826 = vperm.xlu0 %1651, %v1680_v6  }
 0x574   :  { %v706_v7 = vpop.permute.xlu0 %705 }
 0x575   :  { %v709_v9 = vpop.permute.xlu1 %708  ;;  %v713_v10 = vrot.slane %v706_v7, %v672_v37 }
 0x576   :  { %v717_v12 = vrot.slane %v709_v9, %v672_v37 }
 0x578   :  { %v718_v13 = vsel %vm678_vm12, %v717_v12, %v713_v10 }
 0x579   :  { %v824_v17 = vpop.permute.xlu1 %823  ;;  %v827_v0 = vpop.permute.xlu0 %826  ;;  %v720_v18 = vsel %vm681_vm14, %v718_v13, 0.0 }
 0x57a   :  { %v831_v19 = vrot.slane %v824_v17, %v672_v37  ;;  %v835_v20 = vrot.slane %v827_v0, %v672_v37  ;;  %721 = vadd.xlane.f32.xlu1 %v720_v18 }
 0x57c   :  { %v836_v21 = vsel %vm678_vm12, %v835_v20, %v831_v19  ;;  %v1546_v20 = vld [vmem:[#allocation8 + $0x3] ss:$0 sm:$0xff] }
 0x57d   :  { %v838_v15 = vsel %vm681_vm14, %v836_v21, 0.0 }
 0x57e   :  { %839 = vadd.xlane.f32.xlu0 %v838_v15 }
 0x603   :  { %v722_v22 = vpop.xlane.xlu1 %721 }
 0x604   :  { %1681 = vrcp.f32 %v722_v22 }
 0x607   :  { %v840_v23 = vpop.xlane.xlu0 %839 }
 0x608   :  { %1683 = vrcp.f32 %v840_v23 }
 0x611   :  { %v1682_v24 = vpop.eup %1681 }
 0x612   :  { %v732_v25 = vrot.slane %v1682_v24, %v2115_v16  ;;  %v728_v26 = vrot.slane %v1682_v24, %v1831_v4 }
 0x614   :  { %v736_v27 = vmul.f32 %v1676_v63, %v732_v25  ;;  %v735_v28 = vmul.f32 %v1674_v62, %v728_v26 }
 0x615   :  { %v1684_v29 = vpop.eup %1683 }
 0x616   :  { %744 = vperm.xlu1 %1650, %v736_v27   ;;  %739 = vperm.xlu0 %1651, %v735_v28   ;;  %v850_v30 = vrot.slane %v1684_v29, %v2115_v16  ;;  %v846_v31 = vrot.slane %v1684_v29, %v1831_v4 }
 0x618   :  { %v854_v32 = vmul.f32 %v1680_v6, %v850_v30  ;;  %v853_v33 = vmul.f32 %v1678_v5, %v846_v31 }
 0x61a   :  { %862 = vperm.xlu0 %1651, %v854_v32   ;;  %857 = vperm.xlu1 %1650, %v853_v33  }
 0x691   :  { %v745_v35 = vpop.permute.xlu1 %744  ;;  %v740_v36 = vpop.permute.xlu0 %739 }
 0x692   :  { %v748_v37 = vmul.f32 %v745_v35, %v2072_v11  ;;  %v747_v16 = vmul.f32 %v740_v36, %v2069_v8 }
 0x694   :  { %v757_v38 = vsel %vm749_vm15, %v748_v37, 0.0  ;;  %v750_v4 = vsel %vm749_vm15, %v747_v16, 0.0 }
 0x695   :  { %v758_v39 = vrot.slane %v757_v38, 4  ;;  %v751_v40 = vrot.slane %v750_v4, 4  ;;  %v858_v41 = vpop.permute.xlu1 %857  ;;  %v863_v42 = vpop.permute.xlu0 %862 }
 0x696   :  { %v865_v43 = vmul.f32 %v858_v41, %v2069_v8  ;;  %v866_v44 = vmul.f32 %v863_v42, %v2072_v11 }
 0x697   :  { %v759_v45 = vadd.f32 %v758_v39, %v757_v38  ;;  %v752_v46 = vadd.f32 %v751_v40, %v750_v4  ;;  %v1662_v4 = vld [vmem:[%s2215_s4 + $0x20] sm:$0xff]  }
 0x698   :  { %v868_v47 = vsel %vm867_vm0, %v865_v43, 0.0  ;;  %v875_v49 = vsel %vm867_vm0, %v866_v44, 0.0  ;;  %v1550_v43 = vld [vmem:[#allocation8 + $0x4] ss:$0 sm:$0xff] }
 0x699   :  { %v760_v1 = vrot.slane %v759_v45, 2  ;;  %v753_v14 = vrot.slane %v752_v46, 2  ;;  %v869_v50 = vrot.slane %v868_v47, 4  ;;  %v876_v51 = vrot.slane %v875_v49, 4 }
 0x69b   :  { %v761_v52 = vadd.f32 %v760_v1, %v759_v45  ;;  %v754_v53 = vadd.f32 %v753_v14, %v752_v46  ;;  %v870_v54 = vadd.f32 %v869_v50, %v868_v47  ;;  %v877_v55 = vadd.f32 %v876_v51, %v875_v49  ;;  %v1551_v46 = vld [vmem:[#allocation8 + $0x5] ss:$0 sm:$0xff] }
 0x69d   :  { %v762_v57 = vrot.slane %v761_v52, 1  ;;  %v755_v8 = vrot.slane %v754_v53, 1  ;;  %v871_v58 = vrot.slane %v870_v54, 2  ;;  %v878_v11 = vrot.slane %v877_v55, 2 }
 0x69f   :  { %v872_v59 = vadd.f32 %v871_v58, %v870_v54  ;;  %v879_v60 = vadd.f32 %v878_v11, %v877_v55  ;;  %v763_v61 = vadd.f32 %v762_v57, %v761_v52  ;;  %v756_v62 = vadd.f32 %v755_v8, %v754_v53  ;;  %v1663_v8 = vld [vmem:[%s2215_s4 + $0x48] sm:$0xff]   ;;  %v1664_v58 = vld [vmem:[%s2215_s4 + $0x40] sm:$0xff]   ;;  %v1665_v11 = vld [vmem:[%s2215_s4 + $0x38] sm:$0xff]  }
 0x6a1   :  { %v873_v63 = vrot.slane %v872_v59, 1  ;;  %v880_v5 = vrot.slane %v879_v60, 1  ;;  %v884_v9 = vsel %vm678_vm12, %v763_v61, %v756_v62 }
 0x6a3   :  { %v874_v6 = vadd.f32 %v873_v63, %v872_v59  ;;  %v881_v7 = vadd.f32 %v880_v5, %v879_v60  ;;  %v1666_v59 = vld [vmem:[%s2215_s4 + $0x30] sm:$0xff]   ;;  %v1552_v60 = vld [vmem:[#allocation8 + $0x6] ss:$0 sm:$0xff] }
 0x6a5   :  { %v890_v10 = vsel %vm678_vm12, %v881_v7, %v874_v6 }
 0x6a6   :  { %v1652_v12 = vpack.i.bf16 %v890_v10, %v884_v9 }
 0x6a8   :  { %1653 = vrot.lane.b32.xlu1 %v1652_v12, %s1764_s28 }
 0x71a   :  { %v1654_v13 = vpop.permute.xlu1 %1653 }
 0x71b   :  { %v1656_v17 = vunpack.i.h.bf16 %v1654_v13  ;;  %v1655_v0 = vunpack.i.l.bf16 %v1654_v13 }
 0x71d   :  { %v894_v18 = vsel %vm634_vm13, %v1655_v0, %v1656_v17 }
 0x71e   :  { %v899_v19 = vpack.c.bf16 %v894_v18, %v894_v18 }
 0x720   :  { %1602 = vmatmul.mubr.msk.bf16.vlgmr.msra.gmra.mxu1 %vm376_vm7, %v899_v19 }
 0x721   :  { %1621 = vmatprep.mubr.msk.bf16.mxu1 %vm1760_vm8, %v1759_v48  ;;  %1614 = vmatpush3.bf16.msra.mxu1 %v1663_v8 }
 0x722   :  { %1615 = vmatprep.subr.bf16.mxu1 %v1759_v48 }
 0x725   :  { %1616 = vmatpush3.bf16.msra.mxu1 %v1664_v58 }
 0x726   :  { %1617 = vmatprep.subr.bf16.mxu1 %v1759_v48 }
 0x729   :  { %1618 = vmatpush3.bf16.msra.mxu1 %v1665_v11  ;;  %v1564_v11 = vld [vmem:[#allocation8 + $0xa] ss:$0 sm:$0xff] }
 0x72a   :  { %1619 = vmatprep.subr.bf16.mxu1 %v1759_v48 }
 0x72d   :  { %1620 = vmatpush3.bf16.msra.mxu1 %v1666_v59 }
 0x7e0   :  { %v954_v21 = vpop.f32.mrf.mxu1 }
 0x7e1   :  { %v955_v15 = vadd.f32 %v1546_v20, %v954_v21  ;;  %v1556_v21 = vld [vmem:[#allocation8 + $0x7] ss:$0 sm:$0xff] }
 0x7e2   :  { %v1603_v22 = vpop.f32.mrf.mxu1 }
 0x7e3   :  { %v961_v23 = vrot.slane %v955_v15, 1  ;;  %v964_v27 = vadd.f32 %v955_v15, %v2060_v2  ;;  %v1661_v2 = vld [vmem:[%s2215_s4 + $0x28] sm:$0xff]  }
 0x7e4   :  { %v957_v24 = vpop.f32.mrf.mxu1  ;;  %1606 = vmatpush3.bf16.msra.mxu0 %v1661_v2 }
 0x7e5   :  { %v965_v25 = vadd.f32 %v961_v23, %v2062_v3  ;;  %1607 = vmatprep.subr.bf16.mxu0 %v1759_v48 }
 0x7e6   :  { %v1604_v26 = vpop.f32.mrf.mxu1 }
 0x7e7   :  { %v970_v28 = vrot.slane %v965_v25, 7 }
 0x7e8   :  { %1608 = vmatpush3.bf16.msra.mxu0 %v1662_v4  ;;  %v1308_v4 = vld [vmem:[#allocation8 + $0xc] sm:$0x1] }
 0x7e9   :  { %v971_v29 = vsel %vm678_vm12, %v970_v28, %v964_v27  ;;  %1625 = vmatprep.subr.bf16.mxu0 %v1759_v48 }
 0x7ea   :  { %v974_v30 = vsel %vm973_vm1, %v971_v29, 0.0 }
 0x7eb   :  { %975 = vadd.xlane.f32.xlu0 %v974_v30 }
 0x874   :  { %v976_v31 = vpop.xlane.xlu0 %975 }
 0x875   :  { %v977_v32 = vmul.f32 0.03125, %v976_v31 }
 0x877   :  { %v979_v33 = vrot.slane %v977_v32, 1  ;;  %v982_v34 = vsub.f32 %v964_v27, %v977_v32 }
 0x879   :  { %v983_v35 = vsub.f32 %v965_v25, %v979_v33  ;;  %v984_v37 = vmul.f32 %v982_v34, %v982_v34 }
 0x87b   :  { %v985_v36 = vmul.f32 %v983_v35, %v983_v35 }
 0x87d   :  { %v988_v16 = vrot.slane %v985_v36, 7 }
 0x87f   :  { %v989_v3 = vsel %vm678_vm12, %v988_v16, %v984_v37 }
 0x880   :  { %v991_v38 = vsel %vm973_vm1, %v989_v3, 0.0 }
 0x881   :  { %992 = vadd.xlane.f32.xlu1 %v991_v38 }
 0x90a   :  { %v993_v39 = vpop.xlane.xlu1 %992 }
 0x90b   :  { %v994_v40 = vmul.f32 0.03125, %v993_v39  ;;  %v1667_v39 = vld [vmem:[%s2215_s4 + $0x58] sm:$0xff]  }
 0x90d   :  { %v995_v41 = vadd.f32 1e-12, %v994_v40  ;;  %v1668_v40 = vld [vmem:[%s2215_s4 + $0x50] sm:$0xff]  }
 0x90f   :  { %1685 = vrsqrt.f32 %v995_v41 }
 0x91c   :  { %v1686_v42 = vpop.eup %1685 }
 0x91d   :  { %v998_v44 = vrot.slane %v1686_v42, 1  ;;  %v1001_v45 = vmul.f32 %v1686_v42, %v982_v34 }
 0x91f   :  { %v1002_v47 = vmul.f32 %v998_v44, %v983_v35  ;;  %v1007_v49 = vmul.f32 %v1550_v43, %v1001_v45  ;;  %v1562_v45 = vld [vmem:[#allocation8 + $0x8] ss:$0 sm:$0xff] }
 0x921   :  { %v1008_v1 = vmul.f32 %v1550_v43, %v1002_v47  ;;  %v1013_v14 = vadd.f32 %v1551_v46, %v1007_v49  ;;  %v1563_v49 = vld [vmem:[#allocation8 + $0x9] ss:$0 sm:$0xff] }
 0x923   :  { %v1014_v50 = vadd.f32 %v1551_v46, %v1008_v1  ;;  %v1019_v51 = vpack.c.bf16 %v1013_v14, %v1013_v14 }
 0x925   :  { %v1020_v52 = vpack.c.bf16 %v1014_v50, %v1014_v50  ;;  %v1028_v54 = vunpack.c.l.b16 %v1019_v51 }
 0x927   :  { %v1029_v53 = vunpack.c.l.b16 %v1020_v52 }
 0x929   :  { %v1030_v55 = vrot.slane %v1029_v53, 7 }
 0x92b   :  { %v1031_v56 = vsel %vm678_vm12, %v1030_v55, %v1028_v54 }
 0x92c   :  { %v1032_v57 = vpack.c.b16 %v1031_v56, %v1031_v56 }
 0x92e   :  { %1610 = vmatmul.mubr.msk.bf16.vlgmr.msra.gmra.mxu0 %vm376_vm7, %v1032_v57 }
 0x92f   :  { %1629 = vmatprep.mubr.msk.bf16.mxu0 %vm1760_vm8, %v1759_v48  ;;  %1626 = vmatpush3.bf16.msra.mxu0 %v1667_v39 }
 0x930   :  { %1627 = vmatprep.subr.bf16.mxu0 %v1759_v48 }
 0x933   :  { %1628 = vmatpush3.bf16.msra.mxu0 %v1668_v40 }
 0x934   :  { %1633 = vmatprep.subr.mxu0 %v1759_v48 }
 0x9ee   :  { %v1082_v61 = vpop.f32.mrf.mxu0 }
 0x9ef   :  { %v1083_v62 = vadd.f32 %v1552_v60, %v1082_v61 }
 0x9f0   :  { %v1611_v63 = vpop.f32.mrf.mxu0 }
 0x9f1   :  { %v1088_v5 = vmul.f32 %v1083_v62, %v1083_v62 }
 0x9f2   :  { %v1085_v6 = vpop.f32.mrf.mxu0 }
 0x9f3   :  { %v1089_v7 = vmul.f32 %v1088_v5, %v1083_v62  ;;  %v1307_v5 = vld [vmem:[#allocation8 + $0xb] sm:$0x1] }
 0x9f4   :  { %v1612_v9 = vpop.f32.mrf.mxu0 }
 0x9f5   :  { %v1090_v10 = vmul.f32 0.044715, %v1089_v7 }
 0x9f7   :  { %v1091_v12 = vadd.f32 %v1090_v10, %v1083_v62 }
 0x9f9   :  { %v1092_v13 = vmul.f32 0.7978846, %v1091_v12 }
 0x9fb   :  { %1687 = vtanh.f32 %v1092_v13 }
 0xa08   :  { %v1688_v17 = vpop.eup %1687 }
 0xa09   :  { %v1094_v0 = vadd.f32 1.0, %v1688_v17 }
 0xa0b   :  { %v1095_v18 = vmul.f32 0.5, %v1094_v0 }
 0xa0d   :  { %v1096_v19 = vmul.f32 %v1095_v18, %v1083_v62 }
 0xa0f   :  { %v1105_v20 = vpack.c.bf16 %v1096_v19, %v1096_v19 }
 0xa11   :  { %1622 = vmatmul.mubr.msk.bf16.vlgmr.msra.gmra.mxu1 %vm1135_vm2, %v1105_v20 }
 0xad1   :  { %v1173_v15 = vpop.f32.mrf.mxu1 }
 0xad2   :  { %v1174_v22 = vadd.f32 %v1556_v21, %v1173_v15 }
 0xad3   :  { %v1623_v23 = vpop.f32.mrf.mxu1 }
 0xad4   :  { %v1180_v24 = vrot.slane %v1174_v22, 1  ;;  %v1183_v28 = vadd.f32 %v1174_v22, %v1013_v14 }
 0xad5   :  { %v1176_v25 = vpop.f32.mrf.mxu1 }
 0xad6   :  { %v1184_v26 = vadd.f32 %v1180_v24, %v1014_v50 }
 0xad7   :  { %v1624_v27 = vpop.f32.mrf.mxu1 }
 0xad8   :  { %v1189_v29 = vrot.slane %v1184_v26, 7 }
 0xada   :  { %v1190_v30 = vsel %vm678_vm12, %v1189_v29, %v1183_v28 }
 0xadb   :  { %v1192_v31 = vsel %vm973_vm1, %v1190_v30, 0.0 }
 0xadc   :  { %1193 = vadd.xlane.f32.xlu0 %v1192_v31 }
 0xb65   :  { %v1194_v32 = vpop.xlane.xlu0 %1193 }
 0xb66   :  { %v1195_v33 = vmul.f32 0.03125, %v1194_v32 }
 0xb68   :  { %v1197_v34 = vrot.slane %v1195_v33, 1  ;;  %v1200_v35 = vsub.f32 %v1183_v28, %v1195_v33 }
 0xb6a   :  { %v1201_v36 = vsub.f32 %v1184_v26, %v1197_v34  ;;  %v1202_v16 = vmul.f32 %v1200_v35, %v1200_v35 }
 0xb6c   :  { %v1203_v37 = vmul.f32 %v1201_v36, %v1201_v36 }
 0xb6e   :  { %v1206_v3 = vrot.slane %v1203_v37, 7 }
 0xb70   :  { %v1207_v38 = vsel %vm678_vm12, %v1206_v3, %v1202_v16 }
 0xb71   :  { %v1209_v2 = vsel %vm973_vm1, %v1207_v38, 0.0 }
 0xb72   :  { %1210 = vadd.xlane.f32.xlu0 %v1209_v2 }
 0xb88   :  { %1311 = vperm.xlu0 %1651, %v1308_v4  }
 0xbfb   :  { %v1211_v41 = vpop.xlane.xlu0 %1210 }
 0xbfc   :  { %v1212_v42 = vmul.f32 0.03125, %v1211_v41 }
 0xbfe   :  { %v1213_v43 = vadd.f32 1e-12, %v1212_v42 }
 0xc00   :  { %1689 = vrsqrt.f32 %v1213_v43 }
 0xc03   :  { %v1312_v7 = vpop.permute.xlu0 %1311 }
 0xc0d   :  { %v1690_v44 = vpop.eup %1689 }
 0xc0e   :  { %v1216_v46 = vrot.slane %v1690_v44, 1  ;;  %v1219_v47 = vmul.f32 %v1690_v44, %v1200_v35 }
 0xc10   :  { %v1220_v1 = vmul.f32 %v1216_v46, %v1201_v36  ;;  %v1225_v14 = vmul.f32 %v1562_v45, %v1219_v47 }
 0xc12   :  { %v1226_v50 = vmul.f32 %v1562_v45, %v1220_v1  ;;  %v1231_v51 = vadd.f32 %v1563_v49, %v1225_v14 }
 0xc14   :  { %v1232_v52 = vadd.f32 %v1563_v49, %v1226_v50  ;;  %v1237_v53 = vpack.c.bf16 %v1231_v51, %v1231_v51 }
 0xc16   :  { %v1238_v54 = vpack.c.bf16 %v1232_v52, %v1232_v52  ;;  %v1246_v56 = vunpack.c.l.b16 %v1237_v53 }
 0xc18   :  { %v1247_v55 = vunpack.c.l.b16 %v1238_v54 }
 0xc1a   :  { %v1248_v57 = vrot.slane %v1247_v55, 7 }
 0xc1c   :  { %v1249_v8 = vsel %vm678_vm12, %v1248_v57, %v1246_v56 }
 0xc1d   :  { %v1250_v58 = vpack.c.b16 %v1249_v8, %v1249_v8 }
 0xc1f   :  { %1630 = vmatmul.mubr.msk.bf16.vlgmr.msra.gmra.mxu0 %vm376_vm7, %v1250_v58 }
 0xc20   :  { %1635 = vmatprep.mubr.msk.f32.mxu0 %vm1760_vm8, %v1759_v48 }
 0xcdf   :  { %v1300_v59 = vpop.f32.mrf.mxu0 }
 0xce0   :  { %v1301_v60 = vadd.f32 %v1564_v11, %v1300_v59 }
 0xce1   :  { %v1631_v61 = vpop.f32.mrf.mxu0 }
 0xce2   :  { %v1306_v62 = vmax.f32 %v1301_v60, 0.0 }
 0xce3   :  { %v1303_v63 = vpop.f32.mrf.mxu0 }
 0xce4   :  { %1634 = vmatpush3.xpose.msk.msra.mxu0 %vm634_vm13, %v1306_v62 }
 0xce5   :  { %v1632_v6 = vpop.f32.mrf.mxu0 }
 0xce7   :  { %1636 = vmatmul.mubr.msk.f32.vlgmr.msra.gmra.mxu0 %vm634_vm13, %v1307_v5 }
 0xda7   :  { %v1386_v9 = vpop.f32.mrf.mxu0 }
 0xda8   :  { %v1387_v10 = vadd.f32 %v1386_v9, %v1312_v7 }
 0xda9   :  { %v1637_v12 = vpop.f32.mrf.mxu0 }
 0xdaa   :  { %v1391_v13 = vsel %vm1390_vm3, %v1387_v10, 0.0 }
 0xdab   :  { %1392 = vst [vmem:[%s2217_s6] sm:$0x1] %v1391_v13 }
 0xdac   :  { %1397 = vsyncpa [#allocation3], 1 }
 0xdad   :  { %1398 = vsyncpa [#allocation4], 1 }
 0xdae   :  { %1399 = vsyncpa [#allocation6], 1 }

</bundles_post_ra>
